<compile_context>
chip_gen: v7x
topology: tpu7x:2x2x1
jax: 0.10.0
libtpu: 0.0.40
codegen_flags: <defaults>
</compile_context>

<pallas_src>
import jax
import jax.numpy as jnp
from jax import lax
from jax.experimental import pallas as pl
from jax.experimental.pallas import tpu as pltpu

N_OUT = 3        # logical number of output classes (argmax flat-index stride)
C_PAD = 8        # output layer padded only to 8 columns (was 128)
HIDDEN = 128
OUT_LANES = 128  # lane-dense int32 result row per candidate


def _mlp_argmax_kernel(x_ref, w1_ref, w2_ref, w3_ref, b12_ref, b3_ref,
                       out_ref):
    PB = w1_ref.shape[0]
    B = x_ref.shape[0]
    CP = w3_ref.shape[2]

    # Hoisted out of the unrolled per-candidate loop (no CSE inside it).
    x = x_ref[...].astype(jnp.bfloat16)
    row = lax.broadcasted_iota(jnp.int32, (B, CP), 0)
    col = lax.broadcasted_iota(jnp.int32, (B, CP), 1)
    flat_idx = row * N_OUT + col            # torch.argmax flat index (stride 3)
    valid = col < N_OUT
    sentinel = jnp.int32(B * CP)

    out_rows = []
    for p in range(PB):                     # short static unroll over block
        w1 = w1_ref[p]                      # (IN, H)  bf16
        w2 = w2_ref[p]                      # (H, H)   bf16
        w3 = w3_ref[p]                      # (H, CP)  bf16
        b12 = b12_ref[p]                    # (2, H)   f32
        b3 = b3_ref[p]                      # (1, CP)  f32 (cols >= 3 = -1e30)

        h1 = jnp.dot(x, w1, preferred_element_type=jnp.float32)
        h1 = jnp.maximum(h1 + b12[0:1, :], 0.0)                   # f32 VPU

        h2 = jnp.dot(h1.astype(jnp.bfloat16), w2,
                     preferred_element_type=jnp.float32)
        h2 = jnp.maximum(h2 + b12[1:2, :], 0.0)                   # f32 VPU

        logits = jnp.dot(h2.astype(jnp.bfloat16), w3,
                         preferred_element_type=jnp.float32)
        logits = logits + b3                # (B, CP)

        # torch.argmax over the flattened (B, N_OUT) logits, first occurrence
        # on ties.  Padded columns are doubly protected: bias -1e30 and the
        # explicit col < N_OUT mask.
        max_val = jnp.max(logits)
        cand = jnp.where((logits == max_val) & valid, flat_idx, sentinel)
        idx = jnp.min(cand).astype(jnp.int32)

        out_rows.append(jnp.full((1, out_ref.shape[1]), idx, jnp.int32))

    # One (PB, 128) lane- and sublane-dense unmasked store per grid step.
    out_ref[...] = jnp.concatenate(out_rows, axis=0)


def population_forward(x, w1, w2, w3, b12, b3, *, pb=8):
    """Evaluate every candidate network on the shared input x.

    x:   (B, IN)            float32
    w1:  (P, IN, 128) bf16
    w2:  (P, 128, 128) bf16
    w3:  (P, 128, 8)  bf16  (cols >= 3 are zero)
    b12: (P, 2, 128)  f32   (row 0 = b1, row 1 = b2)
    b3:  (P, 1, 8)    f32   (cols >= 3 are -1e30)
    returns: (P,) int32 argmax index per candidate (torch.argmax semantics).
    """
    P, IN, H = w1.shape
    B = x.shape[0]
    CP = w3.shape[2]

    pb = min(pb, P)
    assert P % pb == 0, (P, pb)
    if pb != P:
        assert pb % 8 == 0, pb              # (pb, 128) output block tiling
    grid = (P // pb,)

    flops = 2 * P * B * (IN * H + H * H + H * CP)
    bytes_accessed = (x.size * 4
                      + (w1.size + w2.size + w3.size) * 2      # bf16 weights
                      + (b12.size + b3.size) * 4               # f32 biases
                      + P * OUT_LANES * 4)                     # int32 output

    grid_spec = pltpu.PrefetchScalarGridSpec(
        num_scalar_prefetch=0,
        grid=grid,
        in_specs=[
            pl.BlockSpec((B, IN), lambda p: (0, 0)),           # x resident
            pl.BlockSpec((pb, IN, H), lambda p: (p, 0, 0)),    # candidate block
            pl.BlockSpec((pb, H, H), lambda p: (p, 0, 0)),
            pl.BlockSpec((pb, H, CP), lambda p: (p, 0, 0)),
            pl.BlockSpec((pb, 2, H), lambda p: (p, 0, 0)),     # merged b1/b2
            pl.BlockSpec((pb, 1, CP), lambda p: (p, 0, 0)),
        ],
        out_specs=pl.BlockSpec((pb, OUT_LANES), lambda p: (p, 0)),
    )

    out = pl.pallas_call(
        _mlp_argmax_kernel,
        out_shape=jax.ShapeDtypeStruct((P, OUT_LANES), jnp.int32),
        grid_spec=grid_spec,
        compiler_params=pltpu.CompilerParams(
            dimension_semantics=("parallel",)),
        cost_estimate=pl.CostEstimate(
            flops=flops, transcendentals=0, bytes_accessed=bytes_accessed),
    )(x, w1, w2, w3, b12, b3)

    return out[:, 0]


def neural_network_forward(x, w1, b1, w2, b2, w3, b3):
    """Single-network forward matching the original module.

    Takes nn.Linear-style params: w* are (out, in) f32, b* are (out,) f32.
    """
    hidden = w1.shape[0]
    n_out = w3.shape[0]
    w1p = w1.T[None].astype(jnp.bfloat16)                       # (1, IN, H)
    w2p = w2.T[None].astype(jnp.bfloat16)                       # (1, H, H)
    w3p = (jnp.zeros((1, hidden, C_PAD), jnp.float32)
           .at[0, :, :n_out].set(w3.T)).astype(jnp.bfloat16)
    b12 = jnp.stack([b1, b2], axis=0)[None]                     # (1, 2, H)
    b3p = (jnp.full((1, 1, C_PAD), -1e30, jnp.float32)
           .at[0, 0, :n_out].set(b3))
    return population_forward(x, w1p, w2p, w3p, b12, b3p, pb=1)[0]


def init_population(key, pop, input_size, hidden=HIDDEN, n_out=N_OUT,
                    c_pad=C_PAD):
    """Per-candidate params, nn.Linear-style U(-1/sqrt(fan_in), 1/sqrt(fan_in)).

    Weights stored transposed (in, out) and in bf16; output layer padded to
    c_pad=8 columns (bias -1e30 on padding so it never wins the argmax);
    b1/b2 merged into a single (pop, 2, hidden) f32 tensor."""
    ks = jax.random.split(key, 6)

    def unif(k, shape, fan_in):
        bound = 1.0 / (fan_in ** 0.5)
        return jax.random.uniform(k, shape, jnp.float32, -bound, bound)

    w1 = unif(ks[0], (pop, input_size, hidden), input_size).astype(jnp.bfloat16)
    b1 = unif(ks[1], (pop, hidden), input_size)
    w2 = unif(ks[2], (pop, hidden, hidden), hidden).astype(jnp.bfloat16)
    b2 = unif(ks[3], (pop, hidden), hidden)

    w3_real = unif(ks[4], (pop, hidden, n_out), hidden)
    b3_real = unif(ks[5], (pop, n_out), hidden)
    w3 = (jnp.zeros((pop, hidden, c_pad), jnp.float32)
          .at[:, :, :n_out].set(w3_real)).astype(jnp.bfloat16)
    b3 = (jnp.full((pop, 1, c_pad), -1e30, jnp.float32)
          .at[:, 0, :n_out].set(b3_real))
    b12 = jnp.stack([b1, b2], axis=1)                           # (pop, 2, H)
    return w1, w2, w3, b12, b3


if __name__ == "__main__":
    key = jax.random.PRNGKey(0)
    k_x, k_p = jax.random.split(key)

    INPUT_SIZE = 32
    BATCH = 8
    POP = 16        # two candidate blocks of PB=8 -> grid=(2,) ("parallel")
    PB = 8

    x = jax.random.normal(k_x, (BATCH, INPUT_SIZE), jnp.float32)
    w1, w2, w3, b12, b3 = init_population(k_p, POP, INPUT_SIZE)

    fwd = jax.jit(lambda *a: population_forward(*a, pb=PB))
    idx = jax.block_until_ready(fwd(x, w1, w2, w3, b12, b3))

    # Pure-JAX reference of the same forward (same bf16-in / f32-acc dots).
    xb = x.astype(jnp.bfloat16)
    for p in range(POP):
        h1 = jnp.maximum(
            jnp.dot(xb, w1[p], preferred_element_type=jnp.float32)
            + b12[p, 0], 0.0)
        h2 = jnp.maximum(
            jnp.dot(h1.astype(jnp.bfloat16), w2[p],
                    preferred_element_type=jnp.float32) + b12[p, 1], 0.0)
        logits = (jnp.dot(h2.astype(jnp.bfloat16), w3[p, :, :N_OUT],
                          preferred_element_type=jnp.float32)
                  + b3[p, 0, :N_OUT])
        ref_idx = int(jnp.argmax(logits))
        assert int(idx[p]) == ref_idx, (p, int(idx[p]), ref_idx)

    # Single-network wrapper (original module semantics) sanity check.
    w1s = jnp.asarray(w1[0], jnp.float32).T
    w2s = jnp.asarray(w2[0], jnp.float32).T
    w3s = jnp.asarray(w3[0, :, :N_OUT], jnp.float32).T
    single = jax.block_until_ready(
        neural_network_forward(x, w1s, b12[0, 0], w2s, b12[0, 1],
                               w3s, b3[0, 0, :N_OUT]))
    assert int(single) == int(idx[0]), (int(single), int(idx[0]))

    print("KERNEL_OK")
</pallas_src>

<mosaic_0001>
module attributes {stable_mosaic.version = 11 : i64} {
  func.func @_mlp_argmax_kernel(%arg0: i32, %arg1: memref<8x32xf32, #tpu.memory_space<vmem>>, %arg2: memref<8x32x128xbf16, #tpu.memory_space<vmem>>, %arg3: memref<8x128x128xbf16, #tpu.memory_space<vmem>>, %arg4: memref<8x128x8xbf16, #tpu.memory_space<vmem>>, %arg5: memref<8x2x128xf32, #tpu.memory_space<vmem>>, %arg6: memref<8x1x8xf32, #tpu.memory_space<vmem>>, %arg7: memref<8x128xi32, #tpu.memory_space<vmem>>) attributes {dimension_semantics = [#tpu.dimension_semantics<parallel>], iteration_bounds = array<i64: 2>, scalar_prefetch = 0 : i64, scratch_operands = 0 : i64, tpu.core_type = #tpu.core_type<tc>, window_params = [{pipeline_mode = #tpu.pipeline_mode<synchronous>, transform_indices = @transform_0, window_bounds = array<i64: 8, 32>}, {transform_indices = @transform_1, window_bounds = array<i64: 8, 32, 128>}, {transform_indices = @transform_2, window_bounds = array<i64: 8, 128, 128>}, {transform_indices = @transform_3, window_bounds = array<i64: 8, 128, 8>}, {transform_indices = @transform_4, window_bounds = array<i64: 8, 2, 128>}, {transform_indices = @transform_5, window_bounds = array<i64: 8, 1, 8>}, {transform_indices = @transform_6, window_bounds = array<i64: 8, 128>}]} {
    %c0 = arith.constant 0 : index
    %c0_0 = arith.constant 0 : index
    %0 = vector.load %arg1[%c0, %c0_0] : memref<8x32xf32, #tpu.memory_space<vmem>>, vector<8x32xf32>
    %1 = arith.truncf %0 : vector<8x32xf32> to vector<8x32xbf16>
    %2 = tpu.iota {dimensions = array<i32: 0>} : vector<8x8xi32>
    %3 = tpu.iota {dimensions = array<i32: 1>} : vector<8x8xi32>
    %c3_i32 = arith.constant 3 : i32
    %4 = vector.broadcast %c3_i32 : i32 to vector<8x8xi32>
    %5 = arith.muli %2, %4 : vector<8x8xi32>
    %6 = arith.addi %5, %3 : vector<8x8xi32>
    %c3_i32_1 = arith.constant 3 : i32
    %7 = vector.broadcast %c3_i32_1 : i32 to vector<8x8xi32>
    %8 = arith.cmpi slt, %3, %7 : vector<8x8xi32>
    %c0_2 = arith.constant 0 : index
    %c0_3 = arith.constant 0 : index
    %c0_4 = arith.constant 0 : index
    %9 = vector.load %arg2[%c0_2, %c0_3, %c0_4] : memref<8x32x128xbf16, #tpu.memory_space<vmem>>, vector<1x32x128xbf16>
    %10 = vector.shape_cast %9 : vector<1x32x128xbf16> to vector<32x128xbf16>
    %c0_5 = arith.constant 0 : index
    %c0_6 = arith.constant 0 : index
    %c0_7 = arith.constant 0 : index
    %11 = vector.load %arg3[%c0_5, %c0_6, %c0_7] : memref<8x128x128xbf16, #tpu.memory_space<vmem>>, vector<1x128x128xbf16>
    %12 = vector.shape_cast %11 : vector<1x128x128xbf16> to vector<128x128xbf16>
    %c0_8 = arith.constant 0 : index
    %c0_9 = arith.constant 0 : index
    %c0_10 = arith.constant 0 : index
    %13 = vector.load %arg4[%c0_8, %c0_9, %c0_10] : memref<8x128x8xbf16, #tpu.memory_space<vmem>>, vector<1x128x8xbf16>
    %14 = vector.shape_cast %13 : vector<1x128x8xbf16> to vector<128x8xbf16>
    %c0_11 = arith.constant 0 : index
    %c0_12 = arith.constant 0 : index
    %c0_13 = arith.constant 0 : index
    %15 = vector.load %arg5[%c0_11, %c0_12, %c0_13] : memref<8x2x128xf32, #tpu.memory_space<vmem>>, vector<1x2x128xf32>
    %16 = vector.shape_cast %15 : vector<1x2x128xf32> to vector<2x128xf32>
    %c0_14 = arith.constant 0 : index
    %c0_15 = arith.constant 0 : index
    %c0_16 = arith.constant 0 : index
    %17 = vector.load %arg6[%c0_14, %c0_15, %c0_16] : memref<8x1x8xf32, #tpu.memory_space<vmem>>, vector<1x1x8xf32>
    %18 = vector.shape_cast %17 : vector<1x1x8xf32> to vector<1x8xf32>
    %cst = arith.constant dense<0.000000e+00> : vector<8x128xf32>
    %19 = tpu.matmul %1, %10, %cst {dimension_numbers = #tpu.dot_dimension_numbers<[1], [0], [0], [1], [0, 0, 1, 1], [], []>} : vector<8x32xbf16>, vector<32x128xbf16>, vector<8x128xf32> -> vector<8x128xf32>
    %20 = vector.extract_strided_slice %16 {offsets = [0, 0], sizes = [1, 128], strides = [1, 1]} : vector<2x128xf32> to vector<1x128xf32>
    %21 = vector.broadcast %20 : vector<1x128xf32> to vector<8x128xf32>
    %22 = arith.addf %19, %21 : vector<8x128xf32>
    %cst_17 = arith.constant 0.000000e+00 : f32
    %23 = vector.broadcast %cst_17 : f32 to vector<8x128xf32>
    %24 = arith.maximumf %22, %23 : vector<8x128xf32>
    %25 = arith.truncf %24 : vector<8x128xf32> to vector<8x128xbf16>
    %cst_18 = arith.constant dense<0.000000e+00> : vector<8x128xf32>
    %26 = tpu.matmul %25, %12, %cst_18 {dimension_numbers = #tpu.dot_dimension_numbers<[1], [0], [0], [1], [0, 0, 1, 1], [], []>} : vector<8x128xbf16>, vector<128x128xbf16>, vector<8x128xf32> -> vector<8x128xf32>
    %27 = vector.extract_strided_slice %16 {offsets = [1, 0], sizes = [1, 128], strides = [1, 1]} : vector<2x128xf32> to vector<1x128xf32>
    %28 = vector.broadcast %27 : vector<1x128xf32> to vector<8x128xf32>
    %29 = arith.addf %26, %28 : vector<8x128xf32>
    %cst_19 = arith.constant 0.000000e+00 : f32
    %30 = vector.broadcast %cst_19 : f32 to vector<8x128xf32>
    %31 = arith.maximumf %29, %30 : vector<8x128xf32>
    %32 = arith.truncf %31 : vector<8x128xf32> to vector<8x128xbf16>
    %cst_20 = arith.constant dense<0.000000e+00> : vector<8x8xf32>
    %33 = tpu.matmul %32, %14, %cst_20 {dimension_numbers = #tpu.dot_dimension_numbers<[1], [0], [0], [1], [0, 0, 1, 1], [], []>} : vector<8x128xbf16>, vector<128x8xbf16>, vector<8x8xf32> -> vector<8x8xf32>
    %34 = vector.broadcast %18 : vector<1x8xf32> to vector<8x8xf32>
    %35 = arith.addf %33, %34 : vector<8x8xf32>
    %36 = vector.shape_cast %35 : vector<8x8xf32> to vector<1x8x8xf32>
    %cst_21 = arith.constant dense<0xFF800000> : vector<1xf32>
    %37 = vector.multi_reduction <maximumf>, %36, %cst_21 [1, 2] : vector<1x8x8xf32> to vector<1xf32>
    %38 = vector.shape_cast %37 : vector<1xf32> to vector<1x1x1xf32>
    %39 = vector.extract %38[0, 0, 0] : f32 from vector<1x1x1xf32>
    %40 = vector.broadcast %39 : f32 to vector<8x8xf32>
    %41 = arith.cmpf oeq, %35, %40 : vector<8x8xf32>
    %42 = arith.andi %41, %8 : vector<8x8xi1>
    %c64_i32 = arith.constant 64 : i32
    %43 = vector.broadcast %c64_i32 : i32 to vector<8x8xi32>
    %44 = arith.select %42, %6, %43 : vector<8x8xi1>, vector<8x8xi32>
    %45 = vector.shape_cast %44 : vector<8x8xi32> to vector<1x8x8xi32>
    %cst_22 = arith.constant dense<2147483647> : vector<1xi32>
    %46 = vector.multi_reduction <minsi>, %45, %cst_22 [1, 2] : vector<1x8x8xi32> to vector<1xi32>
    %47 = vector.shape_cast %46 : vector<1xi32> to vector<1x1x1xi32>
    %48 = vector.extract %47[0, 0, 0] : i32 from vector<1x1x1xi32>
    %49 = vector.broadcast %48 : i32 to vector<1x128xi32>
    %c1 = arith.constant 1 : index
    %c0_23 = arith.constant 0 : index
    %c0_24 = arith.constant 0 : index
    %50 = vector.load %arg2[%c1, %c0_23, %c0_24] : memref<8x32x128xbf16, #tpu.memory_space<vmem>>, vector<1x32x128xbf16>
    %51 = vector.shape_cast %50 : vector<1x32x128xbf16> to vector<32x128xbf16>
    %c1_25 = arith.constant 1 : index
    %c0_26 = arith.constant 0 : index
    %c0_27 = arith.constant 0 : index
    %52 = vector.load %arg3[%c1_25, %c0_26, %c0_27] : memref<8x128x128xbf16, #tpu.memory_space<vmem>>, vector<1x128x128xbf16>
    %53 = vector.shape_cast %52 : vector<1x128x128xbf16> to vector<128x128xbf16>
    %c1_28 = arith.constant 1 : index
    %c0_29 = arith.constant 0 : index
    %c0_30 = arith.constant 0 : index
    %54 = vector.load %arg4[%c1_28, %c0_29, %c0_30] : memref<8x128x8xbf16, #tpu.memory_space<vmem>>, vector<1x128x8xbf16>
    %55 = vector.shape_cast %54 : vector<1x128x8xbf16> to vector<128x8xbf16>
    %c1_31 = arith.constant 1 : index
    %c0_32 = arith.constant 0 : index
    %c0_33 = arith.constant 0 : index
    %56 = vector.load %arg5[%c1_31, %c0_32, %c0_33] : memref<8x2x128xf32, #tpu.memory_space<vmem>>, vector<1x2x128xf32>
    %57 = vector.shape_cast %56 : vector<1x2x128xf32> to vector<2x128xf32>
    %c1_34 = arith.constant 1 : index
    %c0_35 = arith.constant 0 : index
    %c0_36 = arith.constant 0 : index
    %58 = vector.load %arg6[%c1_34, %c0_35, %c0_36] : memref<8x1x8xf32, #tpu.memory_space<vmem>>, vector<1x1x8xf32>
    %59 = vector.shape_cast %58 : vector<1x1x8xf32> to vector<1x8xf32>
    %cst_37 = arith.constant dense<0.000000e+00> : vector<8x128xf32>
    %60 = tpu.matmul %1, %51, %cst_37 {dimension_numbers = #tpu.dot_dimension_numbers<[1], [0], [0], [1], [0, 0, 1, 1], [], []>} : vector<8x32xbf16>, vector<32x128xbf16>, vector<8x128xf32> -> vector<8x128xf32>
    %61 = vector.extract_strided_slice %57 {offsets = [0, 0], sizes = [1, 128], strides = [1, 1]} : vector<2x128xf32> to vector<1x128xf32>
    %62 = vector.broadcast %61 : vector<1x128xf32> to vector<8x128xf32>
    %63 = arith.addf %60, %62 : vector<8x128xf32>
    %cst_38 = arith.constant 0.000000e+00 : f32
    %64 = vector.broadcast %cst_38 : f32 to vector<8x128xf32>
    %65 = arith.maximumf %63, %64 : vector<8x128xf32>
    %66 = arith.truncf %65 : vector<8x128xf32> to vector<8x128xbf16>
    %cst_39 = arith.constant dense<0.000000e+00> : vector<8x128xf32>
    %67 = tpu.matmul %66, %53, %cst_39 {dimension_numbers = #tpu.dot_dimension_numbers<[1], [0], [0], [1], [0, 0, 1, 1], [], []>} : vector<8x128xbf16>, vector<128x128xbf16>, vector<8x128xf32> -> vector<8x128xf32>
    %68 = vector.extract_strided_slice %57 {offsets = [1, 0], sizes = [1, 128], strides = [1, 1]} : vector<2x128xf32> to vector<1x128xf32>
    %69 = vector.broadcast %68 : vector<1x128xf32> to vector<8x128xf32>
    %70 = arith.addf %67, %69 : vector<8x128xf32>
    %cst_40 = arith.constant 0.000000e+00 : f32
    %71 = vector.broadcast %cst_40 : f32 to vector<8x128xf32>
    %72 = arith.maximumf %70, %71 : vector<8x128xf32>
    %73 = arith.truncf %72 : vector<8x128xf32> to vector<8x128xbf16>
    %cst_41 = arith.constant dense<0.000000e+00> : vector<8x8xf32>
    %74 = tpu.matmul %73, %55, %cst_41 {dimension_numbers = #tpu.dot_dimension_numbers<[1], [0], [0], [1], [0, 0, 1, 1], [], []>} : vector<8x128xbf16>, vector<128x8xbf16>, vector<8x8xf32> -> vector<8x8xf32>
    %75 = vector.broadcast %59 : vector<1x8xf32> to vector<8x8xf32>
    %76 = arith.addf %74, %75 : vector<8x8xf32>
    %77 = vector.shape_cast %76 : vector<8x8xf32> to vector<1x8x8xf32>
    %cst_42 = arith.constant dense<0xFF800000> : vector<1xf32>
    %78 = vector.multi_reduction <maximumf>, %77, %cst_42 [1, 2] : vector<1x8x8xf32> to vector<1xf32>
    %79 = vector.shape_cast %78 : vector<1xf32> to vector<1x1x1xf32>
    %80 = vector.extract %79[0, 0, 0] : f32 from vector<1x1x1xf32>
    %81 = vector.broadcast %80 : f32 to vector<8x8xf32>
    %82 = arith.cmpf oeq, %76, %81 : vector<8x8xf32>
    %83 = arith.andi %82, %8 : vector<8x8xi1>
    %c64_i32_43 = arith.constant 64 : i32
    %84 = vector.broadcast %c64_i32_43 : i32 to vector<8x8xi32>
    %85 = arith.select %83, %6, %84 : vector<8x8xi1>, vector<8x8xi32>
    %86 = vector.shape_cast %85 : vector<8x8xi32> to vector<1x8x8xi32>
    %cst_44 = arith.constant dense<2147483647> : vector<1xi32>
    %87 = vector.multi_reduction <minsi>, %86, %cst_44 [1, 2] : vector<1x8x8xi32> to vector<1xi32>
    %88 = vector.shape_cast %87 : vector<1xi32> to vector<1x1x1xi32>
    %89 = vector.extract %88[0, 0, 0] : i32 from vector<1x1x1xi32>
    %90 = vector.broadcast %89 : i32 to vector<1x128xi32>
    %c2 = arith.constant 2 : index
    %c0_45 = arith.constant 0 : index
    %c0_46 = arith.constant 0 : index
    %91 = vector.load %arg2[%c2, %c0_45, %c0_46] : memref<8x32x128xbf16, #tpu.memory_space<vmem>>, vector<1x32x128xbf16>
    %92 = vector.shape_cast %91 : vector<1x32x128xbf16> to vector<32x128xbf16>
    %c2_47 = arith.constant 2 : index
    %c0_48 = arith.constant 0 : index
    %c0_49 = arith.constant 0 : index
    %93 = vector.load %arg3[%c2_47, %c0_48, %c0_49] : memref<8x128x128xbf16, #tpu.memory_space<vmem>>, vector<1x128x128xbf16>
    %94 = vector.shape_cast %93 : vector<1x128x128xbf16> to vector<128x128xbf16>
    %c2_50 = arith.constant 2 : index
    %c0_51 = arith.constant 0 : index
    %c0_52 = arith.constant 0 : index
    %95 = vector.load %arg4[%c2_50, %c0_51, %c0_52] : memref<8x128x8xbf16, #tpu.memory_space<vmem>>, vector<1x128x8xbf16>
    %96 = vector.shape_cast %95 : vector<1x128x8xbf16> to vector<128x8xbf16>
    %c2_53 = arith.constant 2 : index
    %c0_54 = arith.constant 0 : index
    %c0_55 = arith.constant 0 : index
    %97 = vector.load %arg5[%c2_53, %c0_54, %c0_55] : memref<8x2x128xf32, #tpu.memory_space<vmem>>, vector<1x2x128xf32>
    %98 = vector.shape_cast %97 : vector<1x2x128xf32> to vector<2x128xf32>
    %c2_56 = arith.constant 2 : index
    %c0_57 = arith.constant 0 : index
    %c0_58 = arith.constant 0 : index
    %99 = vector.load %arg6[%c2_56, %c0_57, %c0_58] : memref<8x1x8xf32, #tpu.memory_space<vmem>>, vector<1x1x8xf32>
    %100 = vector.shape_cast %99 : vector<1x1x8xf32> to vector<1x8xf32>
    %cst_59 = arith.constant dense<0.000000e+00> : vector<8x128xf32>
    %101 = tpu.matmul %1, %92, %cst_59 {dimension_numbers = #tpu.dot_dimension_numbers<[1], [0], [0], [1], [0, 0, 1, 1], [], []>} : vector<8x32xbf16>, vector<32x128xbf16>, vector<8x128xf32> -> vector<8x128xf32>
    %102 = vector.extract_strided_slice %98 {offsets = [0, 0], sizes = [1, 128], strides = [1, 1]} : vector<2x128xf32> to vector<1x128xf32>
    %103 = vector.broadcast %102 : vector<1x128xf32> to vector<8x128xf32>
    %104 = arith.addf %101, %103 : vector<8x128xf32>
    %cst_60 = arith.constant 0.000000e+00 : f32
    %105 = vector.broadcast %cst_60 : f32 to vector<8x128xf32>
    %106 = arith.maximumf %104, %105 : vector<8x128xf32>
    %107 = arith.truncf %106 : vector<8x128xf32> to vector<8x128xbf16>
    %cst_61 = arith.constant dense<0.000000e+00> : vector<8x128xf32>
    %108 = tpu.matmul %107, %94, %cst_61 {dimension_numbers = #tpu.dot_dimension_numbers<[1], [0], [0], [1], [0, 0, 1, 1], [], []>} : vector<8x128xbf16>, vector<128x128xbf16>, vector<8x128xf32> -> vector<8x128xf32>
    %109 = vector.extract_strided_slice %98 {offsets = [1, 0], sizes = [1, 128], strides = [1, 1]} : vector<2x128xf32> to vector<1x128xf32>
    %110 = vector.broadcast %109 : vector<1x128xf32> to vector<8x128xf32>
    %111 = arith.addf %108, %110 : vector<8x128xf32>
    %cst_62 = arith.constant 0.000000e+00 : f32
    %112 = vector.broadcast %cst_62 : f32 to vector<8x128xf32>
    %113 = arith.maximumf %111, %112 : vector<8x128xf32>
    %114 = arith.truncf %113 : vector<8x128xf32> to vector<8x128xbf16>
    %cst_63 = arith.constant dense<0.000000e+00> : vector<8x8xf32>
    %115 = tpu.matmul %114, %96, %cst_63 {dimension_numbers = #tpu.dot_dimension_numbers<[1], [0], [0], [1], [0, 0, 1, 1], [], []>} : vector<8x128xbf16>, vector<128x8xbf16>, vector<8x8xf32> -> vector<8x8xf32>
    %116 = vector.broadcast %100 : vector<1x8xf32> to vector<8x8xf32>
    %117 = arith.addf %115, %116 : vector<8x8xf32>
    %118 = vector.shape_cast %117 : vector<8x8xf32> to vector<1x8x8xf32>
    %cst_64 = arith.constant dense<0xFF800000> : vector<1xf32>
    %119 = vector.multi_reduction <maximumf>, %118, %cst_64 [1, 2] : vector<1x8x8xf32> to vector<1xf32>
    %120 = vector.shape_cast %119 : vector<1xf32> to vector<1x1x1xf32>
    %121 = vector.extract %120[0, 0, 0] : f32 from vector<1x1x1xf32>
    %122 = vector.broadcast %121 : f32 to vector<8x8xf32>
    %123 = arith.cmpf oeq, %117, %122 : vector<8x8xf32>
    %124 = arith.andi %123, %8 : vector<8x8xi1>
    %c64_i32_65 = arith.constant 64 : i32
    %125 = vector.broadcast %c64_i32_65 : i32 to vector<8x8xi32>
    %126 = arith.select %124, %6, %125 : vector<8x8xi1>, vector<8x8xi32>
    %127 = vector.shape_cast %126 : vector<8x8xi32> to vector<1x8x8xi32>
    %cst_66 = arith.constant dense<2147483647> : vector<1xi32>
    %128 = vector.multi_reduction <minsi>, %127, %cst_66 [1, 2] : vector<1x8x8xi32> to vector<1xi32>
    %129 = vector.shape_cast %128 : vector<1xi32> to vector<1x1x1xi32>
    %130 = vector.extract %129[0, 0, 0] : i32 from vector<1x1x1xi32>
    %131 = vector.broadcast %130 : i32 to vector<1x128xi32>
    %c3 = arith.constant 3 : index
    %c0_67 = arith.constant 0 : index
    %c0_68 = arith.constant 0 : index
    %132 = vector.load %arg2[%c3, %c0_67, %c0_68] : memref<8x32x128xbf16, #tpu.memory_space<vmem>>, vector<1x32x128xbf16>
    %133 = vector.shape_cast %132 : vector<1x32x128xbf16> to vector<32x128xbf16>
    %c3_69 = arith.constant 3 : index
    %c0_70 = arith.constant 0 : index
    %c0_71 = arith.constant 0 : index
    %134 = vector.load %arg3[%c3_69, %c0_70, %c0_71] : memref<8x128x128xbf16, #tpu.memory_space<vmem>>, vector<1x128x128xbf16>
    %135 = vector.shape_cast %134 : vector<1x128x128xbf16> to vector<128x128xbf16>
    %c3_72 = arith.constant 3 : index
    %c0_73 = arith.constant 0 : index
    %c0_74 = arith.constant 0 : index
    %136 = vector.load %arg4[%c3_72, %c0_73, %c0_74] : memref<8x128x8xbf16, #tpu.memory_space<vmem>>, vector<1x128x8xbf16>
    %137 = vector.shape_cast %136 : vector<1x128x8xbf16> to vector<128x8xbf16>
    %c3_75 = arith.constant 3 : index
    %c0_76 = arith.constant 0 : index
    %c0_77 = arith.constant 0 : index
    %138 = vector.load %arg5[%c3_75, %c0_76, %c0_77] : memref<8x2x128xf32, #tpu.memory_space<vmem>>, vector<1x2x128xf32>
    %139 = vector.shape_cast %138 : vector<1x2x128xf32> to vector<2x128xf32>
    %c3_78 = arith.constant 3 : index
    %c0_79 = arith.constant 0 : index
    %c0_80 = arith.constant 0 : index
    %140 = vector.load %arg6[%c3_78, %c0_79, %c0_80] : memref<8x1x8xf32, #tpu.memory_space<vmem>>, vector<1x1x8xf32>
    %141 = vector.shape_cast %140 : vector<1x1x8xf32> to vector<1x8xf32>
    %cst_81 = arith.constant dense<0.000000e+00> : vector<8x128xf32>
    %142 = tpu.matmul %1, %133, %cst_81 {dimension_numbers = #tpu.dot_dimension_numbers<[1], [0], [0], [1], [0, 0, 1, 1], [], []>} : vector<8x32xbf16>, vector<32x128xbf16>, vector<8x128xf32> -> vector<8x128xf32>
    %143 = vector.extract_strided_slice %139 {offsets = [0, 0], sizes = [1, 128], strides = [1, 1]} : vector<2x128xf32> to vector<1x128xf32>
    %144 = vector.broadcast %143 : vector<1x128xf32> to vector<8x128xf32>
    %145 = arith.addf %142, %144 : vector<8x128xf32>
    %cst_82 = arith.constant 0.000000e+00 : f32
    %146 = vector.broadcast %cst_82 : f32 to vector<8x128xf32>
    %147 = arith.maximumf %145, %146 : vector<8x128xf32>
    %148 = arith.truncf %147 : vector<8x128xf32> to vector<8x128xbf16>
    %cst_83 = arith.constant dense<0.000000e+00> : vector<8x128xf32>
    %149 = tpu.matmul %148, %135, %cst_83 {dimension_numbers = #tpu.dot_dimension_numbers<[1], [0], [0], [1], [0, 0, 1, 1], [], []>} : vector<8x128xbf16>, vector<128x128xbf16>, vector<8x128xf32> -> vector<8x128xf32>
    %150 = vector.extract_strided_slice %139 {offsets = [1, 0], sizes = [1, 128], strides = [1, 1]} : vector<2x128xf32> to vector<1x128xf32>
    %151 = vector.broadcast %150 : vector<1x128xf32> to vector<8x128xf32>
    %152 = arith.addf %149, %151 : vector<8x128xf32>
    %cst_84 = arith.constant 0.000000e+00 : f32
    %153 = vector.broadcast %cst_84 : f32 to vector<8x128xf32>
    %154 = arith.maximumf %152, %153 : vector<8x128xf32>
    %155 = arith.truncf %154 : vector<8x128xf32> to vector<8x128xbf16>
    %cst_85 = arith.constant dense<0.000000e+00> : vector<8x8xf32>
    %156 = tpu.matmul %155, %137, %cst_85 {dimension_numbers = #tpu.dot_dimension_numbers<[1], [0], [0], [1], [0, 0, 1, 1], [], []>} : vector<8x128xbf16>, vector<128x8xbf16>, vector<8x8xf32> -> vector<8x8xf32>
    %157 = vector.broadcast %141 : vector<1x8xf32> to vector<8x8xf32>
    %158 = arith.addf %156, %157 : vector<8x8xf32>
    %159 = vector.shape_cast %158 : vector<8x8xf32> to vector<1x8x8xf32>
    %cst_86 = arith.constant dense<0xFF800000> : vector<1xf32>
    %160 = vector.multi_reduction <maximumf>, %159, %cst_86 [1, 2] : vector<1x8x8xf32> to vector<1xf32>
    %161 = vector.shape_cast %160 : vector<1xf32> to vector<1x1x1xf32>
    %162 = vector.extract %161[0, 0, 0] : f32 from vector<1x1x1xf32>
    %163 = vector.broadcast %162 : f32 to vector<8x8xf32>
    %164 = arith.cmpf oeq, %158, %163 : vector<8x8xf32>
    %165 = arith.andi %164, %8 : vector<8x8xi1>
    %c64_i32_87 = arith.constant 64 : i32
    %166 = vector.broadcast %c64_i32_87 : i32 to vector<8x8xi32>
    %167 = arith.select %165, %6, %166 : vector<8x8xi1>, vector<8x8xi32>
    %168 = vector.shape_cast %167 : vector<8x8xi32> to vector<1x8x8xi32>
    %cst_88 = arith.constant dense<2147483647> : vector<1xi32>
    %169 = vector.multi_reduction <minsi>, %168, %cst_88 [1, 2] : vector<1x8x8xi32> to vector<1xi32>
    %170 = vector.shape_cast %169 : vector<1xi32> to vector<1x1x1xi32>
    %171 = vector.extract %170[0, 0, 0] : i32 from vector<1x1x1xi32>
    %172 = vector.broadcast %171 : i32 to vector<1x128xi32>
    %c4 = arith.constant 4 : index
    %c0_89 = arith.constant 0 : index
    %c0_90 = arith.constant 0 : index
    %173 = vector.load %arg2[%c4, %c0_89, %c0_90] : memref<8x32x128xbf16, #tpu.memory_space<vmem>>, vector<1x32x128xbf16>
    %174 = vector.shape_cast %173 : vector<1x32x128xbf16> to vector<32x128xbf16>
    %c4_91 = arith.constant 4 : index
    %c0_92 = arith.constant 0 : index
    %c0_93 = arith.constant 0 : index
    %175 = vector.load %arg3[%c4_91, %c0_92, %c0_93] : memref<8x128x128xbf16, #tpu.memory_space<vmem>>, vector<1x128x128xbf16>
    %176 = vector.shape_cast %175 : vector<1x128x128xbf16> to vector<128x128xbf16>
    %c4_94 = arith.constant 4 : index
    %c0_95 = arith.constant 0 : index
    %c0_96 = arith.constant 0 : index
    %177 = vector.load %arg4[%c4_94, %c0_95, %c0_96] : memref<8x128x8xbf16, #tpu.memory_space<vmem>>, vector<1x128x8xbf16>
    %178 = vector.shape_cast %177 : vector<1x128x8xbf16> to vector<128x8xbf16>
    %c4_97 = arith.constant 4 : index
    %c0_98 = arith.constant 0 : index
    %c0_99 = arith.constant 0 : index
    %179 = vector.load %arg5[%c4_97, %c0_98, %c0_99] : memref<8x2x128xf32, #tpu.memory_space<vmem>>, vector<1x2x128xf32>
    %180 = vector.shape_cast %179 : vector<1x2x128xf32> to vector<2x128xf32>
    %c4_100 = arith.constant 4 : index
    %c0_101 = arith.constant 0 : index
    %c0_102 = arith.constant 0 : index
    %181 = vector.load %arg6[%c4_100, %c0_101, %c0_102] : memref<8x1x8xf32, #tpu.memory_space<vmem>>, vector<1x1x8xf32>
    %182 = vector.shape_cast %181 : vector<1x1x8xf32> to vector<1x8xf32>
    %cst_103 = arith.constant dense<0.000000e+00> : vector<8x128xf32>
    %183 = tpu.matmul %1, %174, %cst_103 {dimension_numbers = #tpu.dot_dimension_numbers<[1], [0], [0], [1], [0, 0, 1, 1], [], []>} : vector<8x32xbf16>, vector<32x128xbf16>, vector<8x128xf32> -> vector<8x128xf32>
    %184 = vector.extract_strided_slice %180 {offsets = [0, 0], sizes = [1, 128], strides = [1, 1]} : vector<2x128xf32> to vector<1x128xf32>
    %185 = vector.broadcast %184 : vector<1x128xf32> to vector<8x128xf32>
    %186 = arith.addf %183, %185 : vector<8x128xf32>
    %cst_104 = arith.constant 0.000000e+00 : f32
    %187 = vector.broadcast %cst_104 : f32 to vector<8x128xf32>
    %188 = arith.maximumf %186, %187 : vector<8x128xf32>
    %189 = arith.truncf %188 : vector<8x128xf32> to vector<8x128xbf16>
    %cst_105 = arith.constant dense<0.000000e+00> : vector<8x128xf32>
    %190 = tpu.matmul %189, %176, %cst_105 {dimension_numbers = #tpu.dot_dimension_numbers<[1], [0], [0], [1], [0, 0, 1, 1], [], []>} : vector<8x128xbf16>, vector<128x128xbf16>, vector<8x128xf32> -> vector<8x128xf32>
    %191 = vector.extract_strided_slice %180 {offsets = [1, 0], sizes = [1, 128], strides = [1, 1]} : vector<2x128xf32> to vector<1x128xf32>
    %192 = vector.broadcast %191 : vector<1x128xf32> to vector<8x128xf32>
    %193 = arith.addf %190, %192 : vector<8x128xf32>
    %cst_106 = arith.constant 0.000000e+00 : f32
    %194 = vector.broadcast %cst_106 : f32 to vector<8x128xf32>
    %195 = arith.maximumf %193, %194 : vector<8x128xf32>
    %196 = arith.truncf %195 : vector<8x128xf32> to vector<8x128xbf16>
    %cst_107 = arith.constant dense<0.000000e+00> : vector<8x8xf32>
    %197 = tpu.matmul %196, %178, %cst_107 {dimension_numbers = #tpu.dot_dimension_numbers<[1], [0], [0], [1], [0, 0, 1, 1], [], []>} : vector<8x128xbf16>, vector<128x8xbf16>, vector<8x8xf32> -> vector<8x8xf32>
    %198 = vector.broadcast %182 : vector<1x8xf32> to vector<8x8xf32>
    %199 = arith.addf %197, %198 : vector<8x8xf32>
    %200 = vector.shape_cast %199 : vector<8x8xf32> to vector<1x8x8xf32>
    %cst_108 = arith.constant dense<0xFF800000> : vector<1xf32>
    %201 = vector.multi_reduction <maximumf>, %200, %cst_108 [1, 2] : vector<1x8x8xf32> to vector<1xf32>
    %202 = vector.shape_cast %201 : vector<1xf32> to vector<1x1x1xf32>
    %203 = vector.extract %202[0, 0, 0] : f32 from vector<1x1x1xf32>
    %204 = vector.broadcast %203 : f32 to vector<8x8xf32>
    %205 = arith.cmpf oeq, %199, %204 : vector<8x8xf32>
    %206 = arith.andi %205, %8 : vector<8x8xi1>
    %c64_i32_109 = arith.constant 64 : i32
    %207 = vector.broadcast %c64_i32_109 : i32 to vector<8x8xi32>
    %208 = arith.select %206, %6, %207 : vector<8x8xi1>, vector<8x8xi32>
    %209 = vector.shape_cast %208 : vector<8x8xi32> to vector<1x8x8xi32>
    %cst_110 = arith.constant dense<2147483647> : vector<1xi32>
    %210 = vector.multi_reduction <minsi>, %209, %cst_110 [1, 2] : vector<1x8x8xi32> to vector<1xi32>
    %211 = vector.shape_cast %210 : vector<1xi32> to vector<1x1x1xi32>
    %212 = vector.extract %211[0, 0, 0] : i32 from vector<1x1x1xi32>
    %213 = vector.broadcast %212 : i32 to vector<1x128xi32>
    %c5 = arith.constant 5 : index
    %c0_111 = arith.constant 0 : index
    %c0_112 = arith.constant 0 : index
    %214 = vector.load %arg2[%c5, %c0_111, %c0_112] : memref<8x32x128xbf16, #tpu.memory_space<vmem>>, vector<1x32x128xbf16>
    %215 = vector.shape_cast %214 : vector<1x32x128xbf16> to vector<32x128xbf16>
    %c5_113 = arith.constant 5 : index
    %c0_114 = arith.constant 0 : index
    %c0_115 = arith.constant 0 : index
    %216 = vector.load %arg3[%c5_113, %c0_114, %c0_115] : memref<8x128x128xbf16, #tpu.memory_space<vmem>>, vector<1x128x128xbf16>
    %217 = vector.shape_cast %216 : vector<1x128x128xbf16> to vector<128x128xbf16>
    %c5_116 = arith.constant 5 : index
    %c0_117 = arith.constant 0 : index
    %c0_118 = arith.constant 0 : index
    %218 = vector.load %arg4[%c5_116, %c0_117, %c0_118] : memref<8x128x8xbf16, #tpu.memory_space<vmem>>, vector<1x128x8xbf16>
    %219 = vector.shape_cast %218 : vector<1x128x8xbf16> to vector<128x8xbf16>
    %c5_119 = arith.constant 5 : index
    %c0_120 = arith.constant 0 : index
    %c0_121 = arith.constant 0 : index
    %220 = vector.load %arg5[%c5_119, %c0_120, %c0_121] : memref<8x2x128xf32, #tpu.memory_space<vmem>>, vector<1x2x128xf32>
    %221 = vector.shape_cast %220 : vector<1x2x128xf32> to vector<2x128xf32>
    %c5_122 = arith.constant 5 : index
    %c0_123 = arith.constant 0 : index
    %c0_124 = arith.constant 0 : index
    %222 = vector.load %arg6[%c5_122, %c0_123, %c0_124] : memref<8x1x8xf32, #tpu.memory_space<vmem>>, vector<1x1x8xf32>
    %223 = vector.shape_cast %222 : vector<1x1x8xf32> to vector<1x8xf32>
    %cst_125 = arith.constant dense<0.000000e+00> : vector<8x128xf32>
    %224 = tpu.matmul %1, %215, %cst_125 {dimension_numbers = #tpu.dot_dimension_numbers<[1], [0], [0], [1], [0, 0, 1, 1], [], []>} : vector<8x32xbf16>, vector<32x128xbf16>, vector<8x128xf32> -> vector<8x128xf32>
    %225 = vector.extract_strided_slice %221 {offsets = [0, 0], sizes = [1, 128], strides = [1, 1]} : vector<2x128xf32> to vector<1x128xf32>
    %226 = vector.broadcast %225 : vector<1x128xf32> to vector<8x128xf32>
    %227 = arith.addf %224, %226 : vector<8x128xf32>
    %cst_126 = arith.constant 0.000000e+00 : f32
    %228 = vector.broadcast %cst_126 : f32 to vector<8x128xf32>
    %229 = arith.maximumf %227, %228 : vector<8x128xf32>
    %230 = arith.truncf %229 : vector<8x128xf32> to vector<8x128xbf16>
    %cst_127 = arith.constant dense<0.000000e+00> : vector<8x128xf32>
    %231 = tpu.matmul %230, %217, %cst_127 {dimension_numbers = #tpu.dot_dimension_numbers<[1], [0], [0], [1], [0, 0, 1, 1], [], []>} : vector<8x128xbf16>, vector<128x128xbf16>, vector<8x128xf32> -> vector<8x128xf32>
    %232 = vector.extract_strided_slice %221 {offsets = [1, 0], sizes = [1, 128], strides = [1, 1]} : vector<2x128xf32> to vector<1x128xf32>
    %233 = vector.broadcast %232 : vector<1x128xf32> to vector<8x128xf32>
    %234 = arith.addf %231, %233 : vector<8x128xf32>
    %cst_128 = arith.constant 0.000000e+00 : f32
    %235 = vector.broadcast %cst_128 : f32 to vector<8x128xf32>
    %236 = arith.maximumf %234, %235 : vector<8x128xf32>
    %237 = arith.truncf %236 : vector<8x128xf32> to vector<8x128xbf16>
    %cst_129 = arith.constant dense<0.000000e+00> : vector<8x8xf32>
    %238 = tpu.matmul %237, %219, %cst_129 {dimension_numbers = #tpu.dot_dimension_numbers<[1], [0], [0], [1], [0, 0, 1, 1], [], []>} : vector<8x128xbf16>, vector<128x8xbf16>, vector<8x8xf32> -> vector<8x8xf32>
    %239 = vector.broadcast %223 : vector<1x8xf32> to vector<8x8xf32>
    %240 = arith.addf %238, %239 : vector<8x8xf32>
    %241 = vector.shape_cast %240 : vector<8x8xf32> to vector<1x8x8xf32>
    %cst_130 = arith.constant dense<0xFF800000> : vector<1xf32>
    %242 = vector.multi_reduction <maximumf>, %241, %cst_130 [1, 2] : vector<1x8x8xf32> to vector<1xf32>
    %243 = vector.shape_cast %242 : vector<1xf32> to vector<1x1x1xf32>
    %244 = vector.extract %243[0, 0, 0] : f32 from vector<1x1x1xf32>
    %245 = vector.broadcast %244 : f32 to vector<8x8xf32>
    %246 = arith.cmpf oeq, %240, %245 : vector<8x8xf32>
    %247 = arith.andi %246, %8 : vector<8x8xi1>
    %c64_i32_131 = arith.constant 64 : i32
    %248 = vector.broadcast %c64_i32_131 : i32 to vector<8x8xi32>
    %249 = arith.select %247, %6, %248 : vector<8x8xi1>, vector<8x8xi32>
    %250 = vector.shape_cast %249 : vector<8x8xi32> to vector<1x8x8xi32>
    %cst_132 = arith.constant dense<2147483647> : vector<1xi32>
    %251 = vector.multi_reduction <minsi>, %250, %cst_132 [1, 2] : vector<1x8x8xi32> to vector<1xi32>
    %252 = vector.shape_cast %251 : vector<1xi32> to vector<1x1x1xi32>
    %253 = vector.extract %252[0, 0, 0] : i32 from vector<1x1x1xi32>
    %254 = vector.broadcast %253 : i32 to vector<1x128xi32>
    %c6 = arith.constant 6 : index
    %c0_133 = arith.constant 0 : index
    %c0_134 = arith.constant 0 : index
    %255 = vector.load %arg2[%c6, %c0_133, %c0_134] : memref<8x32x128xbf16, #tpu.memory_space<vmem>>, vector<1x32x128xbf16>
    %256 = vector.shape_cast %255 : vector<1x32x128xbf16> to vector<32x128xbf16>
    %c6_135 = arith.constant 6 : index
    %c0_136 = arith.constant 0 : index
    %c0_137 = arith.constant 0 : index
    %257 = vector.load %arg3[%c6_135, %c0_136, %c0_137] : memref<8x128x128xbf16, #tpu.memory_space<vmem>>, vector<1x128x128xbf16>
    %258 = vector.shape_cast %257 : vector<1x128x128xbf16> to vector<128x128xbf16>
    %c6_138 = arith.constant 6 : index
    %c0_139 = arith.constant 0 : index
    %c0_140 = arith.constant 0 : index
    %259 = vector.load %arg4[%c6_138, %c0_139, %c0_140] : memref<8x128x8xbf16, #tpu.memory_space<vmem>>, vector<1x128x8xbf16>
    %260 = vector.shape_cast %259 : vector<1x128x8xbf16> to vector<128x8xbf16>
    %c6_141 = arith.constant 6 : index
    %c0_142 = arith.constant 0 : index
    %c0_143 = arith.constant 0 : index
    %261 = vector.load %arg5[%c6_141, %c0_142, %c0_143] : memref<8x2x128xf32, #tpu.memory_space<vmem>>, vector<1x2x128xf32>
    %262 = vector.shape_cast %261 : vector<1x2x128xf32> to vector<2x128xf32>
    %c6_144 = arith.constant 6 : index
    %c0_145 = arith.constant 0 : index
    %c0_146 = arith.constant 0 : index
    %263 = vector.load %arg6[%c6_144, %c0_145, %c0_146] : memref<8x1x8xf32, #tpu.memory_space<vmem>>, vector<1x1x8xf32>
    %264 = vector.shape_cast %263 : vector<1x1x8xf32> to vector<1x8xf32>
    %cst_147 = arith.constant dense<0.000000e+00> : vector<8x128xf32>
    %265 = tpu.matmul %1, %256, %cst_147 {dimension_numbers = #tpu.dot_dimension_numbers<[1], [0], [0], [1], [0, 0, 1, 1], [], []>} : vector<8x32xbf16>, vector<32x128xbf16>, vector<8x128xf32> -> vector<8x128xf32>
    %266 = vector.extract_strided_slice %262 {offsets = [0, 0], sizes = [1, 128], strides = [1, 1]} : vector<2x128xf32> to vector<1x128xf32>
    %267 = vector.broadcast %266 : vector<1x128xf32> to vector<8x128xf32>
    %268 = arith.addf %265, %267 : vector<8x128xf32>
    %cst_148 = arith.constant 0.000000e+00 : f32
    %269 = vector.broadcast %cst_148 : f32 to vector<8x128xf32>
    %270 = arith.maximumf %268, %269 : vector<8x128xf32>
    %271 = arith.truncf %270 : vector<8x128xf32> to vector<8x128xbf16>
    %cst_149 = arith.constant dense<0.000000e+00> : vector<8x128xf32>
    %272 = tpu.matmul %271, %258, %cst_149 {dimension_numbers = #tpu.dot_dimension_numbers<[1], [0], [0], [1], [0, 0, 1, 1], [], []>} : vector<8x128xbf16>, vector<128x128xbf16>, vector<8x128xf32> -> vector<8x128xf32>
    %273 = vector.extract_strided_slice %262 {offsets = [1, 0], sizes = [1, 128], strides = [1, 1]} : vector<2x128xf32> to vector<1x128xf32>
    %274 = vector.broadcast %273 : vector<1x128xf32> to vector<8x128xf32>
    %275 = arith.addf %272, %274 : vector<8x128xf32>
    %cst_150 = arith.constant 0.000000e+00 : f32
    %276 = vector.broadcast %cst_150 : f32 to vector<8x128xf32>
    %277 = arith.maximumf %275, %276 : vector<8x128xf32>
    %278 = arith.truncf %277 : vector<8x128xf32> to vector<8x128xbf16>
    %cst_151 = arith.constant dense<0.000000e+00> : vector<8x8xf32>
    %279 = tpu.matmul %278, %260, %cst_151 {dimension_numbers = #tpu.dot_dimension_numbers<[1], [0], [0], [1], [0, 0, 1, 1], [], []>} : vector<8x128xbf16>, vector<128x8xbf16>, vector<8x8xf32> -> vector<8x8xf32>
    %280 = vector.broadcast %264 : vector<1x8xf32> to vector<8x8xf32>
    %281 = arith.addf %279, %280 : vector<8x8xf32>
    %282 = vector.shape_cast %281 : vector<8x8xf32> to vector<1x8x8xf32>
    %cst_152 = arith.constant dense<0xFF800000> : vector<1xf32>
    %283 = vector.multi_reduction <maximumf>, %282, %cst_152 [1, 2] : vector<1x8x8xf32> to vector<1xf32>
    %284 = vector.shape_cast %283 : vector<1xf32> to vector<1x1x1xf32>
    %285 = vector.extract %284[0, 0, 0] : f32 from vector<1x1x1xf32>
    %286 = vector.broadcast %285 : f32 to vector<8x8xf32>
    %287 = arith.cmpf oeq, %281, %286 : vector<8x8xf32>
    %288 = arith.andi %287, %8 : vector<8x8xi1>
    %c64_i32_153 = arith.constant 64 : i32
    %289 = vector.broadcast %c64_i32_153 : i32 to vector<8x8xi32>
    %290 = arith.select %288, %6, %289 : vector<8x8xi1>, vector<8x8xi32>
    %291 = vector.shape_cast %290 : vector<8x8xi32> to vector<1x8x8xi32>
    %cst_154 = arith.constant dense<2147483647> : vector<1xi32>
    %292 = vector.multi_reduction <minsi>, %291, %cst_154 [1, 2] : vector<1x8x8xi32> to vector<1xi32>
    %293 = vector.shape_cast %292 : vector<1xi32> to vector<1x1x1xi32>
    %294 = vector.extract %293[0, 0, 0] : i32 from vector<1x1x1xi32>
    %295 = vector.broadcast %294 : i32 to vector<1x128xi32>
    %c7 = arith.constant 7 : index
    %c0_155 = arith.constant 0 : index
    %c0_156 = arith.constant 0 : index
    %296 = vector.load %arg2[%c7, %c0_155, %c0_156] : memref<8x32x128xbf16, #tpu.memory_space<vmem>>, vector<1x32x128xbf16>
    %297 = vector.shape_cast %296 : vector<1x32x128xbf16> to vector<32x128xbf16>
    %c7_157 = arith.constant 7 : index
    %c0_158 = arith.constant 0 : index
    %c0_159 = arith.constant 0 : index
    %298 = vector.load %arg3[%c7_157, %c0_158, %c0_159] : memref<8x128x128xbf16, #tpu.memory_space<vmem>>, vector<1x128x128xbf16>
    %299 = vector.shape_cast %298 : vector<1x128x128xbf16> to vector<128x128xbf16>
    %c7_160 = arith.constant 7 : index
    %c0_161 = arith.constant 0 : index
    %c0_162 = arith.constant 0 : index
    %300 = vector.load %arg4[%c7_160, %c0_161, %c0_162] : memref<8x128x8xbf16, #tpu.memory_space<vmem>>, vector<1x128x8xbf16>
    %301 = vector.shape_cast %300 : vector<1x128x8xbf16> to vector<128x8xbf16>
    %c7_163 = arith.constant 7 : index
    %c0_164 = arith.constant 0 : index
    %c0_165 = arith.constant 0 : index
    %302 = vector.load %arg5[%c7_163, %c0_164, %c0_165] : memref<8x2x128xf32, #tpu.memory_space<vmem>>, vector<1x2x128xf32>
    %303 = vector.shape_cast %302 : vector<1x2x128xf32> to vector<2x128xf32>
    %c7_166 = arith.constant 7 : index
    %c0_167 = arith.constant 0 : index
    %c0_168 = arith.constant 0 : index
    %304 = vector.load %arg6[%c7_166, %c0_167, %c0_168] : memref<8x1x8xf32, #tpu.memory_space<vmem>>, vector<1x1x8xf32>
    %305 = vector.shape_cast %304 : vector<1x1x8xf32> to vector<1x8xf32>
    %cst_169 = arith.constant dense<0.000000e+00> : vector<8x128xf32>
    %306 = tpu.matmul %1, %297, %cst_169 {dimension_numbers = #tpu.dot_dimension_numbers<[1], [0], [0], [1], [0, 0, 1, 1], [], []>} : vector<8x32xbf16>, vector<32x128xbf16>, vector<8x128xf32> -> vector<8x128xf32>
    %307 = vector.extract_strided_slice %303 {offsets = [0, 0], sizes = [1, 128], strides = [1, 1]} : vector<2x128xf32> to vector<1x128xf32>
    %308 = vector.broadcast %307 : vector<1x128xf32> to vector<8x128xf32>
    %309 = arith.addf %306, %308 : vector<8x128xf32>
    %cst_170 = arith.constant 0.000000e+00 : f32
    %310 = vector.broadcast %cst_170 : f32 to vector<8x128xf32>
    %311 = arith.maximumf %309, %310 : vector<8x128xf32>
    %312 = arith.truncf %311 : vector<8x128xf32> to vector<8x128xbf16>
    %cst_171 = arith.constant dense<0.000000e+00> : vector<8x128xf32>
    %313 = tpu.matmul %312, %299, %cst_171 {dimension_numbers = #tpu.dot_dimension_numbers<[1], [0], [0], [1], [0, 0, 1, 1], [], []>} : vector<8x128xbf16>, vector<128x128xbf16>, vector<8x128xf32> -> vector<8x128xf32>
    %314 = vector.extract_strided_slice %303 {offsets = [1, 0], sizes = [1, 128], strides = [1, 1]} : vector<2x128xf32> to vector<1x128xf32>
    %315 = vector.broadcast %314 : vector<1x128xf32> to vector<8x128xf32>
    %316 = arith.addf %313, %315 : vector<8x128xf32>
    %cst_172 = arith.constant 0.000000e+00 : f32
    %317 = vector.broadcast %cst_172 : f32 to vector<8x128xf32>
    %318 = arith.maximumf %316, %317 : vector<8x128xf32>
    %319 = arith.truncf %318 : vector<8x128xf32> to vector<8x128xbf16>
    %cst_173 = arith.constant dense<0.000000e+00> : vector<8x8xf32>
    %320 = tpu.matmul %319, %301, %cst_173 {dimension_numbers = #tpu.dot_dimension_numbers<[1], [0], [0], [1], [0, 0, 1, 1], [], []>} : vector<8x128xbf16>, vector<128x8xbf16>, vector<8x8xf32> -> vector<8x8xf32>
    %321 = vector.broadcast %305 : vector<1x8xf32> to vector<8x8xf32>
    %322 = arith.addf %320, %321 : vector<8x8xf32>
    %323 = vector.shape_cast %322 : vector<8x8xf32> to vector<1x8x8xf32>
    %cst_174 = arith.constant dense<0xFF800000> : vector<1xf32>
    %324 = vector.multi_reduction <maximumf>, %323, %cst_174 [1, 2] : vector<1x8x8xf32> to vector<1xf32>
    %325 = vector.shape_cast %324 : vector<1xf32> to vector<1x1x1xf32>
    %326 = vector.extract %325[0, 0, 0] : f32 from vector<1x1x1xf32>
    %327 = vector.broadcast %326 : f32 to vector<8x8xf32>
    %328 = arith.cmpf oeq, %322, %327 : vector<8x8xf32>
    %329 = arith.andi %328, %8 : vector<8x8xi1>
    %c64_i32_175 = arith.constant 64 : i32
    %330 = vector.broadcast %c64_i32_175 : i32 to vector<8x8xi32>
    %331 = arith.select %329, %6, %330 : vector<8x8xi1>, vector<8x8xi32>
    %332 = vector.shape_cast %331 : vector<8x8xi32> to vector<1x8x8xi32>
    %cst_176 = arith.constant dense<2147483647> : vector<1xi32>
    %333 = vector.multi_reduction <minsi>, %332, %cst_176 [1, 2] : vector<1x8x8xi32> to vector<1xi32>
    %334 = vector.shape_cast %333 : vector<1xi32> to vector<1x1x1xi32>
    %335 = vector.extract %334[0, 0, 0] : i32 from vector<1x1x1xi32>
    %336 = vector.broadcast %335 : i32 to vector<1x128xi32>
    %337 = tpu.concatenate %49, %90, %131, %172, %213, %254, %295, %336 in 0 : vector<1x128xi32>, vector<1x128xi32>, vector<1x128xi32>, vector<1x128xi32>, vector<1x128xi32>, vector<1x128xi32>, vector<1x128xi32>, vector<1x128xi32> -> vector<8x128xi32>
    %c0_177 = arith.constant 0 : index
    %c0_178 = arith.constant 0 : index
    %338 = vector.load %arg7[%c0_177, %c0_178] : memref<8x128xi32, #tpu.memory_space<vmem>>, vector<8x128xi32>
    tpu.vector_store %arg7[%c0_177, %c0_178], %337 {strides = array<i32>} : memref<8x128xi32, #tpu.memory_space<vmem>>, vector<8x128xi32>,
    return
  }
  func.func @transform_0(%arg0: i32) -> (i32, i32) {
    %c0_i32 = arith.constant 0 : i32
    %c0_i32_0 = arith.constant 0 : i32
    %c0_i32_1 = arith.constant 0 : i32
    return %c0_i32, %c0_i32_0 : i32, i32
  }
  func.func @transform_1(%arg0: i32) -> (i32, i32, i32) {
    %c0_i32 = arith.constant 0 : i32
    %c0_i32_0 = arith.constant 0 : i32
    %c0_i32_1 = arith.constant 0 : i32
    return %arg0, %c0_i32, %c0_i32_0 : i32, i32, i32
  }
  func.func @transform_2(%arg0: i32) -> (i32, i32, i32) {
    %c0_i32 = arith.constant 0 : i32
    %c0_i32_0 = arith.constant 0 : i32
    %c0_i32_1 = arith.constant 0 : i32
    return %arg0, %c0_i32, %c0_i32_0 : i32, i32, i32
  }
  func.func @transform_3(%arg0: i32) -> (i32, i32, i32) {
    %c0_i32 = arith.constant 0 : i32
    %c0_i32_0 = arith.constant 0 : i32
    %c0_i32_1 = arith.constant 0 : i32
    return %arg0, %c0_i32, %c0_i32_0 : i32, i32, i32
  }
  func.func @transform_4(%arg0: i32) -> (i32, i32, i32) {
    %c0_i32 = arith.constant 0 : i32
    %c0_i32_0 = arith.constant 0 : i32
    %c0_i32_1 = arith.constant 0 : i32
    return %arg0, %c0_i32, %c0_i32_0 : i32, i32, i32
  }
  func.func @transform_5(%arg0: i32) -> (i32, i32, i32) {
    %c0_i32 = arith.constant 0 : i32
    %c0_i32_0 = arith.constant 0 : i32
    %c0_i32_1 = arith.constant 0 : i32
    return %arg0, %c0_i32, %c0_i32_0 : i32, i32, i32
  }
  func.func @transform_6(%arg0: i32) -> (i32, i32) {
    %c0_i32 = arith.constant 0 : i32
    %c0_i32_0 = arith.constant 0 : i32
    return %arg0, %c0_i32 : i32, i32
  }
}

</mosaic_0001>

<bundles_post_ra>
// kernel: _lambda_.1
= control target key start
LH: loop header
LB: loop body
LE: loop exit
PB: predicated region body
PF: predicated region fallthrough
CT: control target
= control target key end

     0   :  { %11 = vsyncpa [#allocation3], 0  ;;  %s5111_s0 = inlined_call_operand.vmem [shape: f32[8,32], index: 0, kind: input, shape index: {}]   ;;  %s5112_s1 = inlined_call_operand.hbm [shape: bf16[16,32,128], index: 1, kind: input, shape index: {}]   ;;  %s5113_s2 = inlined_call_operand.vmem [shape: bf16[16,128,128], index: 2, kind: input, shape index: {}]   ;;  %s5114_s3 = inlined_call_operand.vmem [shape: bf16[16,128,8], index: 3, kind: input, shape index: {}]   ;;  %s5115_s4 = inlined_call_operand.vmem [shape: f32[16,2,128], index: 4, kind: input, shape index: {}]   ;;  %s5116_s5 = inlined_call_operand.vmem [shape: f32[16,1,8], index: 5, kind: input, shape index: {}]   ;;  %s5117_s6 = inlined_call_operand.vmem [shape: s32[16,128], index: 6, kind: output, shape index: {}]  }
   0x1   :  { %13 = vsyncpa [#allocation3 + $0x1], 0  ;;  %s4458_s21 = smov 0   ;;  %s4460_s22 = smov 0  }
   0x2   :  { %s4462_s23 = smov 0   ;;  %s4464_s24 = smov 0  }
   0x3 LB: > { %s4477_s25 = sadd.s32 4294967295, %s4416_s24   ;;  %s4480_s26 = sadd.s32 1, %s4416_s24   ;;  %s4416_s24 = sphi %s4464_s24, %s5124_s24   ;;  %s4412_s23 = sphi %s4462_s23, %s5123_s23   ;;  %s4408_s22 = sphi %s4460_s22, %s5122_s22   ;;  %s4404_s21 = sphi %s4458_s21, %s5121_s21  }
   0x4   : > { %s44_s27 = ssub.s32 %s4416_s24, %s4480_s26  ;;  %s47_s28 = sadd.s32 1, %s4412_s23 }
   0x5   : > { %p45_p0 = scmp.eq.s32.totalorder %s44_s27, 0  ;;  %p54_p1 = scmp.ne.s32.totalorder %s4412_s23, %s4408_s22 }
   0x6   : > { %p55_p2 = scmp.eq.s32.totalorder %s4416_s24, 0  ;;  %p60_p3 = scmp.ne.s32.totalorder %s4408_s22, %s4404_s21 }
   0x7   : > { %s4490_s29 = scalar_select %p45_p0, %s4412_s23, %s47_s28  }
   0x8   : > { %p56_p4 = por %p55_p2, %p54_p1  ;;  %p61_p5 = scmp.eq.s32.totalorder %s4477_s25, 0 }
   0x9   : > { %p4171_p6 = scmp.lt.s32.totalorder %s4416_s24, 2  ;;  %s217_s7 = sand.u32 1, %s4412_s23  }
   0xa   : > { %p4494_p7 = por %p61_p5, %p60_p3  ;;  %s3133_s8 = sshll.u32 %s217_s7, 7 }
   0xb   : > { %s3578_s9 = sshll.u32 %s4416_s24, 11  ;;  %s221_s13 = scalar_lea.vmem [#allocation2], %s3133_s8 }
   0xc   : > { %s4503_s12 = scalar_lea.hbm %s5112_s1, %s3578_s9  ;;  %s229_s14 = sshll.u32 %s221_s13, 4  ;;  %s4505_s14 = int_to_ptr.vmem [resolvable:$true] %s229_s14 }
   0xd   : > { %p4507_p8 = pnand %p4171_p6, %p56_p4  ;;  %s4512_s16 = scalar_lea.sflag [#allocation3], %s217_s7 }
   0xe   : > { %s4352_s17 = scalar_lea.hbm %s4503_s12, 2048  ;;  %s4357_s20 = scalar_lea.hbm %s5112_s1, 4096 }
   0xf   : > { %p4353_p10 = scmp.ne.s32.totalorder %s4503_s12, %s4352_s17  ;;  %p4354_p11 = pneg %p4507_p8 }
  0x10   : > { %p4358_p0 = scmp.lt.u32.totalorder %s4503_s12, %s5112_s1  ;;  %p4359_p1 = scmp.lt.u32.totalorder %s4357_s20, %s4352_s17 }
  0x11   : > { %p4355_p12 = pnand %p4354_p11, %p4353_p10  ;;  %p4361_p3 = scmp.lt.u32.totalorder %s4352_s17, %s4503_s12 }
  0x12   : > { %p4360_p2 = por %p4359_p1, %p4358_p0 }
  0x13   : > { %p4356_p13 = pneg %p4355_p12 }
  0x14   : > { %p4362_p4 = por %p4361_p3, %p4360_p2 }
  0x16   : > { %p4363_p5 = pnand %p4362_p4, %p4356_p13 }
  0x18   : > { %4366 = shalt.err (!%p4363_p5)
}
  0x19   : > { %s4367_s28 = scalar_lea.vmem %s4505_s14, 2048  ;;  %s4418_s7 = smov [#allocation2]  }
  0x1a   : > { %p4368_p6 = scmp.ne.s32.totalorder %s4505_s14, %s4367_s28  ;;  %s4372_s8 = sshll.u32 %s4418_s7, 4  ;;  %s4373_s8 = int_to_ptr.vmem [resolvable:$false] %s4372_s8 }
  0x1b   : > { %s4374_s9 = scalar_lea.vmem %s4373_s8, 4096  ;;  %p4375_p9 = scmp.lt.s32.totalorder %s4505_s14, %s4373_s8 }
  0x1c   : > { %p4370_p10 = pnand %p4368_p6, %p4354_p11  ;;  %p4376_p0 = scmp.lt.s32.totalorder %s4374_s9, %s4367_s28 }
  0x1e   : > { %p4371_p12 = pneg %p4370_p10  ;;  %p4377_p1 = por %p4376_p0, %p4375_p9 }
  0x20   : > { %p4378_p2 = pnand %p4377_p1, %p4371_p12 }
  0x22   : > { %4381 = shalt.err (!%p4378_p2)
}
  0x23   : > { %s4419_s10 = smov 64   ;;  %s4420_s11 = smov 4  }
  0x24   : > { %4170 = dma.hbm_to_vmem [thread:$0]  (!%p4507_p8), %s4503_s12, 2048, %s4505_s14, %s4512_s16, %s4419_s10, %s4419_s10, %s4420_s11  }
  0x25   : > { %p274_p11 = scmp.lt.s32.totalorder %s4416_s24, 3  ;;  %p5120_p13 = scmp.ge.s32.totalorder %s4416_s24, 1 }
  0x27   : > { %p275_p3 = pnand %p5120_p13, %p274_p11 }
  0x28   : > { %s280_s13 = sand.u32 (!%p275_p3), 1, %s4408_s22  }
  0x29   : > { %278 = sbr.rel (%p275_p3) target bundleno = 3812 (0xee4), region = 44  ;;  %s3138_s17 = sshll.u32 (!%p275_p3), %s280_s13, 7 }
  0x2a   : > { %s281_s18 = scalar_lea.sflag (!%p275_p3), [#allocation3], %s280_s13  ;;  %s4544_s19 = scalar_lea.vmem (!%p275_p3), [#allocation2], %s3138_s17 }
  0x30   : > { %4399 = dma.done.wait (%p4494_p7), %s281_s18, 2048  }
  0x31   : > { %4401 = vsyncadd (%p4494_p7), %s281_s18, 4294965248  ;;  %s3139_s12 = sshll.u32 %s4477_s25, 3  ;;  %v4421_v0 = vmov 0.0   ;;  %vm4422_vm0 = vmmov 0   ;;  %v4208_v1 = vld [vmem:[%s4544_s19] sm:$0xff]   ;;  %v4209_v2 = vld [vmem:[%s4544_s19 + $0x8] sm:$0xff]   ;;  %v366_v19 = vlaneseq }
  0x32   : > { %3749 = vmatprep.subr.bf16.mxu0 %v4421_v0  ;;  %3753 = vmatprep.mubr.msk.bf16.mxu0 %vm4422_vm0, %v4421_v0  ;;  %p335_p8 = scmp.lt.s32.totalorder %s3139_s12, 15  ;;  %v364_v3 = vld [vmem:[%s5111_s0] sm:$0xff]  ;;  %vm427_vm1 = vcmask 261120   ;;  %v4218_v30 = vld [vmem:[%s4544_s19 + $0x10] sm:$0xff]   ;;  %v4219_v32 = vld [vmem:[%s4544_s19 + $0x18] sm:$0xff]   ;;  %vm661_vm2 = vcmask 64512  }
  0x33   : > { %3757 = vmatprep.subr.bf16.mxu1 %v4421_v0  ;;  %3773 = vmatprep.mubr.msk.bf16.mxu1 %vm4422_vm0, %v4421_v0  ;;  %v4572_v5 = vpack.c.bf16 %v364_v3, %v364_v3  ;;  %v4613_v20 = vshrl.u32 %v366_v19, 7  ;;  %v4236_v61 = vld [vmem:[%s4544_s19 + $0x20] sm:$0xff]   ;;  %v4237_v63 = vld [vmem:[%s4544_s19 + $0x28] sm:$0xff]   ;;  %p359_p7 = scmp.lt.s32.totalorder %s4477_s25, 1 }
  0x34   : > { %s5126_s12 = smov (!%p335_p8, %s3139_s12), 15  ;;  %3750 = vmatpush3.bf16.msra.mxu0 %v4208_v1 }
  0x35   : > { %s3579_s24 = sshll.u32 %s5126_s12, 6  ;;  %3751 = vmatprep.subr.bf16.mxu0 %v4421_v0  ;;  %s3146_s7 = sshll.u32 %s5126_s12, 1  ;;  %v4621_v21 = vsub.s32 0, %v4613_v20  ;;  %v4640_v35 = vsub.s32 1, %v4613_v20 }
  0x36   : > { %s4564_s15 = scalar_lea.vmem %s5113_s2, %s3579_s24  ;;  %s4583_s28 = scalar_lea.vmem %s5114_s3, %s3579_s24 }
  0x37   : > { %v4210_v4 = vld [vmem:[%s4564_s15] sm:$0xff]   ;;  %v4211_v6 = vld [vmem:[%s4564_s15 + $0x8] sm:$0xff]   ;;  %v4212_v7 = vld [vmem:[%s4564_s15 + $0x10] sm:$0xff]   ;;  %s4618_s10 = scalar_lea.vmem %s5115_s4, %s3146_s7  ;;  %s4696_s17 = scalar_lea.vmem %s5116_s5, %s5126_s12 }
  0x38   : > { %3758 = vmatpush3.bf16.msra.mxu1 %v4210_v4  ;;  %3752 = vmatpush3.bf16.msra.mxu0 %v4209_v2  ;;  %v4213_v8 = vld [vmem:[%s4564_s15 + $0x18] sm:$0xff]   ;;  %v4214_v9 = vld [vmem:[%s4564_s15 + $0x20] sm:$0xff]   ;;  %v4215_v10 = vld [vmem:[%s4564_s15 + $0x28] sm:$0xff]   ;;  %s5128_s25 = smov (!%p359_p7, %s4477_s25), 1 }
  0x39   : > { %3759 = vmatprep.subr.bf16.mxu1 %v4421_v0  ;;  %3777 = vmatprep.subr.bf16.mxu0 %v4421_v0  ;;  %v4216_v11 = vld [vmem:[%s4564_s15 + $0x30] sm:$0xff]   ;;  %v4217_v12 = vld [vmem:[%s4564_s15 + $0x38] sm:$0xff]   ;;  %v4220_v13 = vld [vmem:[%s4583_s28] sm:$0xff]  }
  0x3a   : > { %v4221_v14 = vld [vmem:[%s4583_s28 + $0x8] sm:$0xff]   ;;  %v4222_v15 = vld [vmem:[%s4583_s28 + $0x10] sm:$0xff]   ;;  %v4223_v16 = vld [vmem:[%s4583_s28 + $0x18] sm:$0xff]  }
  0x3b   : > { %3754 = vmatmul.mubr.msk.bf16.vlgmr.msra.gmra.mrb[0].mxu0 %vm427_vm1, %v4572_v5  ;;  %v4224_v17 = vld [vmem:[%s4583_s28 + $0x20] sm:$0xff]   ;;  %v4225_v18 = vld [vmem:[%s4583_s28 + $0x28] sm:$0xff]   ;;  %v4226_v33 = vld [vmem:[%s4583_s28 + $0x30] sm:$0xff]  }
  0x3c   : > { %3760 = vmatpush3.bf16.msra.mxu1 %v4211_v6  ;;  %3793 = vmatprep.mubr.msk.bf16.mxu0 %vm4422_vm0, %v4421_v0  ;;  %v409_v22 = vld [vmem:[%s4618_s10] sm:$0x3]  ;;  %v4227_v34 = vld [vmem:[%s4583_s28 + $0x38] sm:$0xff]   ;;  %v4229_v45 = vld [vmem:[%s4564_s15 + $0x48] sm:$0xff]  }
  0x3d   : > { %3761 = vmatprep.subr.bf16.mxu1 %v4421_v0  ;;  %3778 = vmatpush3.bf16.msra.mxu0 %v4220_v13  ;;  %v414_v23 = vrot.slane %v409_v22, %v4621_v21  ;;  %v476_v36 = vrot.slane %v409_v22, %v4640_v35  ;;  %v4228_v43 = vld [vmem:[%s4564_s15 + $0x40] sm:$0xff]   ;;  %v4230_v50 = vld [vmem:[%s4564_s15 + $0x50] sm:$0xff]   ;;  %v4231_v51 = vld [vmem:[%s4564_s15 + $0x58] sm:$0xff]  }
  0x3e   : > { %3779 = vmatprep.subr.bf16.mxu0 %v4421_v0  ;;  %v4232_v52 = vld [vmem:[%s4564_s15 + $0x60] sm:$0xff]   ;;  %v4233_v55 = vld [vmem:[%s4564_s15 + $0x68] sm:$0xff]   ;;  %v4234_v57 = vld [vmem:[%s4564_s15 + $0x70] sm:$0xff]  }
  0x3f   : > { %v4654_v53 = vld [vmem:[%s4618_s10 + $0x2] sm:$0x3]  ;;  %v4235_v59 = vld [vmem:[%s4564_s15 + $0x78] sm:$0xff]   ;;  %v4239_v1 = vld [vmem:[%s4583_s28 + $0x48] sm:$0xff]  }
  0x40   : > { %3762 = vmatpush3.bf16.msra.mxu1 %v4212_v7  ;;  %v748_v54 = vrot.slane %v4654_v53, %v4621_v21  ;;  %v4238_v62 = vld [vmem:[%s4583_s28 + $0x40] sm:$0xff]   ;;  %v4240_v2 = vld [vmem:[%s4583_s28 + $0x50] sm:$0xff]   ;;  %v4241_v3 = vld [vmem:[%s4583_s28 + $0x58] sm:$0xff]  }
  0x41   : > { %3763 = vmatprep.subr.bf16.mxu1 %v4421_v0  ;;  %3780 = vmatpush3.bf16.msra.mxu0 %v4221_v14  ;;  %v4242_v4 = vld [vmem:[%s4583_s28 + $0x60] sm:$0xff]   ;;  %v4243_v6 = vld [vmem:[%s4583_s28 + $0x68] sm:$0xff]   ;;  %v4244_v7 = vld [vmem:[%s4583_s28 + $0x70] sm:$0xff]  }
  0x42   : > { %3781 = vmatprep.subr.bf16.mxu0 %v4421_v0 }
  0x44   : > { %3764 = vmatpush3.bf16.msra.mxu1 %v4213_v8  ;;  %v4245_v8 = vld [vmem:[%s4583_s28 + $0x78] sm:$0xff]  }
  0x45   : > { %3765 = vmatprep.subr.bf16.mxu1 %v4421_v0  ;;  %3782 = vmatpush3.bf16.msra.mxu0 %v4222_v15 }
  0x46   : > { %3783 = vmatprep.subr.bf16.mxu0 %v4421_v0 }
  0x48   : > { %3766 = vmatpush3.bf16.msra.mxu1 %v4214_v9  ;;  %v3160_v9 = vld [vmem:[%s4696_s17] ss:$0 sm:$0xff] }
  0x49   : > { %3767 = vmatprep.subr.bf16.mxu1 %v4421_v0  ;;  %3784 = vmatpush3.bf16.msra.mxu0 %v4223_v16  ;;  %v806_v16 = vrot.slane %v4654_v53, %v4640_v35  ;;  %v370_v53 = vmul.u32 3, %v4613_v20 }
  0x4a   : > { %3785 = vmatprep.subr.bf16.mxu0 %v4421_v0 }
  0x4c   : > { %3768 = vmatpush3.bf16.msra.mxu1 %v4215_v10 }
  0x4d   : > { %3769 = vmatprep.subr.bf16.mxu1 %v4421_v0  ;;  %3786 = vmatpush3.bf16.msra.mxu0 %v4224_v17 }
  0x4e   : > { %3787 = vmatprep.subr.bf16.mxu0 %v4421_v0 }
  0x50   : > { %3770 = vmatpush3.bf16.msra.mxu1 %v4216_v11 }
  0x51   : > { %3771 = vmatprep.subr.bf16.mxu1 %v4421_v0  ;;  %3788 = vmatpush3.bf16.msra.mxu0 %v4225_v18 }
  0x52   : > { %3789 = vmatprep.subr.bf16.mxu0 %v4421_v0 }
  0x54   : > { %3772 = vmatpush3.bf16.msra.mxu1 %v4217_v12 }
  0x55   : > { %3797 = vmatprep.subr.bf16.mxu1 %v4421_v0  ;;  %3790 = vmatpush3.bf16.msra.mxu0 %v4226_v33  ;;  %v4249_v33 = vld [vmem:[%s4564_s15 + $0x98] sm:$0xff]  }
  0x56   : > { %3791 = vmatprep.subr.bf16.mxu0 %v4421_v0 }
  0x59   : > { %3792 = vmatpush3.bf16.msra.mxu0 %v4227_v34 }
  0x5a   : > { %3805 = vmatprep.subr.bf16.mxu0 %v4421_v0 }
 0x10e   : > { %v465_v24 = vpop.f32.mrb[0].mxu0 }
 0x10f   : > { %v466_v25 = vadd.f32 %v465_v24, %v414_v23  ;;  %v3755_v26 = vpop.f32.mrb[1].mxu0 }
 0x110   : > { %v468_v27 = vpop.f32.mrb[2].mxu0 }
 0x111   : > { %v471_v28 = vmax.f32 %v466_v25, 0.0  ;;  %v3756_v29 = vpop.f32.mrb[3].mxu0  ;;  %v4246_v27 = vld [vmem:[%s4564_s15 + $0x80] sm:$0xff]  }
 0x112   : > { %v4248_v29 = vld [vmem:[%s4564_s15 + $0x90] sm:$0xff]  }
 0x113   : > { %v472_v31 = vpack.c.bf16 %v471_v28, %v471_v28  ;;  %v4247_v28 = vld [vmem:[%s4564_s15 + $0x88] sm:$0xff]  }
 0x115   : > { %3774 = vmatmul.mubr.bf16.vlgmr.msra.gmra.mrb[0].mxu1 %v472_v31 }
 0x116   : > { %3798 = vmatpush3.bf16.msra.mxu1 %v4218_v30  ;;  %3801 = vmatprep.mubr.msk.bf16.mxu1 %vm4422_vm0, %v4421_v0 }
 0x117   : > { %3799 = vmatprep.subr.bf16.mxu1 %v4421_v0 }
 0x11a   : > { %3800 = vmatpush3.bf16.msra.mxu1 %v4219_v32 }
 0x11b   : > { %3825 = vmatprep.subr.bf16.mxu1 %v4421_v0 }
 0x11d   : > { %3802 = vmatmul.mubr.msk.bf16.vlgmr.msra.gmra.mrb[4].mxu1 %vm427_vm1, %v4572_v5 }
 0x11e   : > { %3841 = vmatprep.mubr.msk.bf16.mxu1 %vm4422_vm0, %v4421_v0  ;;  %3826 = vmatpush3.bf16.msra.mxu1 %v4238_v62  ;;  %v4258_v62 = vld [vmem:[%s4583_s28 + $0x90] sm:$0xff]  }
 0x11f   : > { %3827 = vmatprep.subr.bf16.mxu1 %v4421_v0 }
 0x122   : > { %3828 = vmatpush3.bf16.msra.mxu1 %v4239_v1 }
 0x123   : > { %3829 = vmatprep.subr.bf16.mxu1 %v4421_v0 }
 0x126   : > { %3830 = vmatpush3.bf16.msra.mxu1 %v4240_v2 }
 0x127   : > { %3831 = vmatprep.subr.bf16.mxu1 %v4421_v0 }
 0x12a   : > { %3832 = vmatpush3.bf16.msra.mxu1 %v4241_v3  ;;  %v4260_v3 = vld [vmem:[%s4583_s28 + $0xa0] sm:$0xff]  }
 0x12b   : > { %3833 = vmatprep.subr.bf16.mxu1 %v4421_v0 }
 0x12e   : > { %3834 = vmatpush3.bf16.msra.mxu1 %v4242_v4 }
 0x12f   : > { %3835 = vmatprep.subr.bf16.mxu1 %v4421_v0 }
 0x132   : > { %3836 = vmatpush3.bf16.msra.mxu1 %v4243_v6 }
 0x133   : > { %3837 = vmatprep.subr.bf16.mxu1 %v4421_v0 }
 0x136   : > { %3838 = vmatpush3.bf16.msra.mxu1 %v4244_v7  ;;  %v4261_v7 = vld [vmem:[%s4583_s28 + $0xa8] sm:$0xff]  }
 0x137   : > { %3839 = vmatprep.subr.bf16.mxu1 %v4421_v0 }
 0x13a   : > { %3840 = vmatpush3.bf16.msra.mxu1 %v4245_v8  ;;  %v4262_v8 = vld [vmem:[%s4583_s28 + $0xb0] sm:$0xff]  }
 0x13b   : > { %3853 = vmatprep.subr.bf16.mxu1 %v4421_v0 }
 0x1e8   : > { %v559_v37 = vpop.f32.mrb[0].mxu1 }
 0x1e9   : > { %v560_v38 = vadd.f32 %v559_v37, %v476_v36  ;;  %v3775_v39 = vpop.f32.mrb[1].mxu1  ;;  %v4250_v36 = vld [vmem:[%s4564_s15 + $0xa0] sm:$0xff]  }
 0x1ea   : > { %v562_v40 = vpop.f32.mrb[2].mxu1  ;;  %v4716_v37 = vld [vmem:[%s4618_s10 + $0x4] sm:$0x3]  ;;  %v4251_v39 = vld [vmem:[%s4564_s15 + $0xa8] sm:$0xff]  }
 0x1eb   : > { %v565_v41 = vmax.f32 %v560_v38, 0.0  ;;  %v3776_v42 = vpop.f32.mrb[3].mxu1  ;;  %v1077_v38 = vrot.slane %v4716_v37, %v4621_v21 }
 0x1ed   : > { %v566_v44 = vpack.c.bf16 %v565_v41, %v565_v41  ;;  %v4252_v41 = vld [vmem:[%s4564_s15 + $0xb0] sm:$0xff]  }
 0x1ef   : > { %3794 = vmatmul.mubr.bf16.vlgmr.msra.gmra.mrb[4].mxu0 %v566_v44 }
 0x1f0   : > { %3806 = vmatpush3.bf16.msra.mxu0 %v4228_v43  ;;  %v795_v46 = vpop.f32.mrb[4].mxu1  ;;  %3821 = vmatprep.mubr.msk.bf16.mxu0 %vm4422_vm0, %v4421_v0  ;;  %v4253_v43 = vld [vmem:[%s4564_s15 + $0xb8] sm:$0xff]  }
 0x1f1   : > { %3807 = vmatprep.subr.bf16.mxu0 %v4421_v0  ;;  %v3803_v47 = vpop.f32.mrb[5].mxu1  ;;  %v796_v56 = vadd.f32 %v795_v46, %v748_v54 }
 0x1f2   : > { %v798_v48 = vpop.f32.mrb[6].mxu1 }
 0x1f3   : > { %v3804_v49 = vpop.f32.mrb[7].mxu1  ;;  %v801_v58 = vmax.f32 %v796_v56, 0.0 }
 0x1f4   : > { %3808 = vmatpush3.bf16.msra.mxu0 %v4229_v45 }
 0x1f5   : > { %3809 = vmatprep.subr.bf16.mxu0 %v4421_v0  ;;  %v802_v60 = vpack.c.bf16 %v801_v58, %v801_v58  ;;  %v4254_v58 = vld [vmem:[%s4544_s19 + $0x30] sm:$0xff]  }
 0x1f8   : > { %3810 = vmatpush3.bf16.msra.mxu0 %v4230_v50 }
 0x1f9   : > { %3811 = vmatprep.subr.bf16.mxu0 %v4421_v0 }
 0x1fc   : > { %3812 = vmatpush3.bf16.msra.mxu0 %v4231_v51 }
 0x1fd   : > { %3813 = vmatprep.subr.bf16.mxu0 %v4421_v0 }
 0x200   : > { %3814 = vmatpush3.bf16.msra.mxu0 %v4232_v52  ;;  %v4731_v52 = vand.u32 127, %v366_v19 }
 0x201   : > { %3815 = vmatprep.subr.bf16.mxu0 %v4421_v0 }
 0x202   : > { %v4735_v54 = vadd.s32 %v370_v53, %v4731_v52  ;;  %vm372_vm3 = vcmp.lt.s32.totalorder %v4731_v52, 3 }
 0x204   : > { %3816 = vmatpush3.bf16.msra.mxu0 %v4233_v55 }
 0x205   : > { %3817 = vmatprep.subr.bf16.mxu0 %v4421_v0 }
 0x208   : > { %3818 = vmatpush3.bf16.msra.mxu0 %v4234_v57 }
 0x209   : > { %3819 = vmatprep.subr.bf16.mxu0 %v4421_v0 }
 0x20c   : > { %3820 = vmatpush3.bf16.msra.mxu0 %v4235_v59  ;;  %v4256_v59 = vld [vmem:[%s4583_s28 + $0x80] sm:$0xff]  }
 0x20d   : > { %3845 = vmatprep.subr.bf16.mxu0 %v4421_v0 }
 0x20f   : > { %3822 = vmatmul.mubr.bf16.vlgmr.msra.gmra.mrb[8].mxu0 %v802_v60  ;;  %v4255_v60 = vld [vmem:[%s4544_s19 + $0x38] sm:$0xff]  }
 0x210   : > { %3849 = vmatprep.mubr.msk.bf16.mxu0 %vm4422_vm0, %v4421_v0  ;;  %3846 = vmatpush3.bf16.msra.mxu0 %v4236_v61  ;;  %v4257_v61 = vld [vmem:[%s4583_s28 + $0x88] sm:$0xff]  }
 0x211   : > { %3847 = vmatprep.subr.bf16.mxu0 %v4421_v0 }
 0x214   : > { %3848 = vmatpush3.bf16.msra.mxu0 %v4237_v63  ;;  %v4259_v63 = vld [vmem:[%s4583_s28 + $0x98] sm:$0xff]  }
 0x215   : > { %3873 = vmatprep.subr.bf16.mxu0 %v4421_v0 }
 0x217   : > { %3850 = vmatmul.mubr.msk.bf16.vlgmr.msra.gmra.mrb[12].mxu0 %vm427_vm1, %v4572_v5 }
 0x218   : > { %3889 = vmatprep.mubr.msk.bf16.mxu0 %vm4422_vm0, %v4421_v0  ;;  %3874 = vmatpush3.bf16.msra.mxu0 %v4256_v59 }
 0x219   : > { %3875 = vmatprep.subr.bf16.mxu0 %v4421_v0 }
 0x21c   : > { %3876 = vmatpush3.bf16.msra.mxu0 %v4257_v61 }
 0x21d   : > { %3877 = vmatprep.subr.bf16.mxu0 %v4421_v0 }
 0x220   : > { %3878 = vmatpush3.bf16.msra.mxu0 %v4258_v62 }
 0x221   : > { %3879 = vmatprep.subr.bf16.mxu0 %v4421_v0 }
 0x224   : > { %3880 = vmatpush3.bf16.msra.mxu0 %v4259_v63 }
 0x225   : > { %3881 = vmatprep.subr.bf16.mxu0 %v4421_v0 }
 0x228   : > { %3882 = vmatpush3.bf16.msra.mxu0 %v4260_v3 }
 0x229   : > { %3883 = vmatprep.subr.bf16.mxu0 %v4421_v0 }
 0x22c   : > { %3884 = vmatpush3.bf16.msra.mxu0 %v4261_v7 }
 0x22d   : > { %3885 = vmatprep.subr.bf16.mxu0 %v4421_v0 }
 0x230   : > { %3886 = vmatpush3.bf16.msra.mxu0 %v4262_v8 }
 0x231   : > { %3887 = vmatprep.subr.bf16.mxu0 %v4421_v0 }
 0x2c2   : > { %v655_v10 = vpop.f32.mrb[4].mxu0 }
 0x2c3   : > { %v4699_v11 = vadd.f32 %v3160_v9, %v655_v10  ;;  %v3795_v12 = vpop.f32.mrb[5].mxu0  ;;  %v4263_v9 = vld [vmem:[%s4583_s28 + $0xb8] sm:$0xff]   ;;  %v1135_v10 = vrot.slane %v4716_v37, %v4640_v35  ;;  %v4268_v37 = vld [vmem:[%s4564_s15 + $0xe0] sm:$0xff]  }
 0x2c4   : > { %v658_v13 = vpop.f32.mrb[6].mxu0  ;;  %3888 = vmatpush3.bf16.msra.mxu0 %v4263_v9 }
 0x2c5   : > { %v3796_v14 = vpop.f32.mrb[7].mxu0  ;;  %v662_v15 = vsel %vm661_vm2, %v4699_v11, -inf  ;;  %3901 = vmatprep.subr.bf16.mxu0 %v4421_v0 }
 0x2c6   : > { %663 = vmax.xlane.f32.xlu0 %v662_v15 }
 0x2e2   : > { %v889_v17 = vpop.f32.mrb[8].mxu0 }
 0x2e3   : > { %v890_v18 = vadd.f32 %v889_v17, %v806_v16  ;;  %v3823_v22 = vpop.f32.mrb[9].mxu0 }
 0x2e4   : > { %v892_v23 = vpop.f32.mrb[10].mxu0  ;;  %v3218_v22 = vld [vmem:[%s4696_s17 + $0x1] ss:$0 sm:$0xff] }
 0x2e5   : > { %v895_v24 = vmax.f32 %v890_v18, 0.0  ;;  %v3824_v25 = vpop.f32.mrb[11].mxu0 }
 0x2e7   : > { %v896_v26 = vpack.c.bf16 %v895_v24, %v895_v24 }
 0x2e9   : > { %3842 = vmatmul.mubr.bf16.vlgmr.msra.gmra.mrb[8].mxu1 %v896_v26 }
 0x2ea   : > { %3869 = vmatprep.mubr.msk.bf16.mxu1 %vm4422_vm0, %v4421_v0  ;;  %3854 = vmatpush3.bf16.msra.mxu1 %v4246_v27  ;;  %v1124_v30 = vpop.f32.mrb[12].mxu0 }
 0x2eb   : > { %3855 = vmatprep.subr.bf16.mxu1 %v4421_v0  ;;  %v3851_v31 = vpop.f32.mrb[13].mxu0  ;;  %v1125_v40 = vadd.f32 %v1124_v30, %v1077_v38  ;;  %v4266_v30 = vld [vmem:[%s4564_s15 + $0xd0] sm:$0xff]   ;;  %v4785_v38 = vld [vmem:[%s4618_s10 + $0x6] sm:$0x3] }
 0x2ec   : > { %v1127_v32 = vpop.f32.mrb[14].mxu0 }
 0x2ed   : > { %v3852_v34 = vpop.f32.mrb[15].mxu0  ;;  %v1130_v42 = vmax.f32 %v1125_v40, 0.0  ;;  %v4269_v40 = vld [vmem:[%s4564_s15 + $0xe8] sm:$0xff]  }
 0x2ee   : > { %3856 = vmatpush3.bf16.msra.mxu1 %v4247_v28  ;;  %v4264_v28 = vld [vmem:[%s4564_s15 + $0xc0] sm:$0xff]  }
 0x2ef   : > { %3857 = vmatprep.subr.bf16.mxu1 %v4421_v0  ;;  %v1131_v44 = vpack.c.bf16 %v1130_v42, %v1130_v42  ;;  %v4270_v42 = vld [vmem:[%s4564_s15 + $0xf0] sm:$0xff]  }
 0x2f2   : > { %3858 = vmatpush3.bf16.msra.mxu1 %v4248_v29  ;;  %v4265_v29 = vld [vmem:[%s4564_s15 + $0xc8] sm:$0xff]  }
 0x2f3   : > { %3859 = vmatprep.subr.bf16.mxu1 %v4421_v0 }
 0x2f6   : > { %3860 = vmatpush3.bf16.msra.mxu1 %v4249_v33 }
 0x2f7   : > { %3861 = vmatprep.subr.bf16.mxu1 %v4421_v0 }
 0x2fa   : > { %3862 = vmatpush3.bf16.msra.mxu1 %v4250_v36  ;;  %v4267_v36 = vld [vmem:[%s4564_s15 + $0xd8] sm:$0xff]  }
 0x2fb   : > { %3863 = vmatprep.subr.bf16.mxu1 %v4421_v0 }
 0x2fe   : > { %3864 = vmatpush3.bf16.msra.mxu1 %v4251_v39  ;;  %v1406_v39 = vrot.slane %v4785_v38, %v4621_v21 }
 0x2ff   : > { %3865 = vmatprep.subr.bf16.mxu1 %v4421_v0 }
 0x302   : > { %3866 = vmatpush3.bf16.msra.mxu1 %v4252_v41 }
 0x303   : > { %3867 = vmatprep.subr.bf16.mxu1 %v4421_v0 }
 0x306   : > { %3868 = vmatpush3.bf16.msra.mxu1 %v4253_v43 }
 0x307   : > { %3893 = vmatprep.subr.bf16.mxu1 %v4421_v0 }
 0x309   : > { %3870 = vmatmul.mubr.bf16.vlgmr.msra.gmra.mrb[12].mxu1 %v1131_v44  ;;  %v4271_v44 = vld [vmem:[%s4564_s15 + $0xf8] sm:$0xff]  }
 0x30a   : > { %3897 = vmatprep.mubr.msk.bf16.mxu1 %vm4422_vm0, %v4421_v0  ;;  %3894 = vmatpush3.bf16.msra.mxu1 %v4254_v58 }
 0x30b   : > { %3895 = vmatprep.subr.bf16.mxu1 %v4421_v0 }
 0x30e   : > { %3896 = vmatpush3.bf16.msra.mxu1 %v4255_v60 }
 0x30f   : > { %3921 = vmatprep.subr.bf16.mxu1 %v4421_v0 }
 0x311   : > { %3898 = vmatmul.mubr.msk.bf16.vlgmr.msra.gmra.mrb[16].mxu1 %vm427_vm1, %v4572_v5 }
 0x312   : > { %3937 = vmatprep.mubr.msk.bf16.mxu1 %vm4422_vm0, %v4421_v0 }
 0x353   : > { %v664_v45 = vpop.xlane.xlu0 %663 }
 0x354   : > { %v665_v46 = vrot.slane %v664_v45, 4 }
 0x356   : > { %v666_v47 = vmax.f32 %v664_v45, %v665_v46 }
 0x358   : > { %v667_v48 = vrot.slane %v666_v47, 2 }
 0x35a   : > { %v668_v49 = vmax.f32 %v666_v47, %v667_v48 }
 0x35c   : > { %v669_v50 = vrot.slane %v668_v49, 1 }
 0x35e   : > { %v670_v51 = vmax.f32 %v668_v49, %v669_v50 }
 0x360   : > { %4133 = vpush %v670_v51 }
 0x391   : > { %s4134_s18 = spop %4133 }
 0x392   : > { %v672_v55 = vstv %s4134_s18 }
 0x393   : > { %vm673_vm4 = vcmp.eq.f32.partialorder %v4699_v11, %v672_v55 }
 0x394   : > { %vm674_vm5 = vmand %vm673_vm4, %vm372_vm3  ;;  %vm3005_vm4 = vcmask 1040384  }
 0x395   : > { %v675_v19 = vsel %vm674_vm5, %v4735_v54, 64 }
 0x396   : > { %v676_v56 = vsel %vm661_vm2, %v675_v19, 2147483647 }
 0x397   : > { %v678_v57 = vshra.s32 %v676_v56, 16  ;;  %v677_v18 = vand.u32 65535, %v676_v56 }
 0x399   : > { %v680_v20 = vcvt.s32.f32 %v678_v57  ;;  %v679_v25 = vcvt.s32.f32 %v677_v18  ;;  %v4276_v18 = vld [vmem:[%s4583_s28 + $0xd0] sm:$0xff]  }
 0x39b   : > { %681 = vmin.xlane.f32.xlu0 %v680_v20 }
 0x3bc   : > { %v985_v1 = vpop.f32.mrb[8].mxu1 }
 0x3bd   : > { %v3843_v2 = vpop.f32.mrb[9].mxu1  ;;  %v4772_v24 = vadd.f32 %v3218_v22, %v985_v1  ;;  %v4277_v22 = vld [vmem:[%s4583_s28 + $0xd8] sm:$0xff]  }
 0x3be   : > { %v988_v4 = vpop.f32.mrb[10].mxu1 }
 0x3bf   : > { %v3844_v6 = vpop.f32.mrb[11].mxu1  ;;  %v991_v27 = vsel %vm661_vm2, %v4772_v24, -inf }
 0x3dc   : > { %v1218_v11 = vpop.f32.mrb[12].mxu1 }
 0x3dd   : > { %v1219_v12 = vadd.f32 %v1218_v11, %v1135_v10  ;;  %v3871_v13 = vpop.f32.mrb[13].mxu1  ;;  %v3276_v11 = vld [vmem:[%s4696_s17 + $0x2] ss:$0 sm:$0xff] }
 0x3de   : > { %v1221_v14 = vpop.f32.mrb[14].mxu1 }
 0x3df   : > { %v1224_v15 = vmax.f32 %v1219_v12, 0.0  ;;  %v3872_v16 = vpop.f32.mrb[15].mxu1  ;;  %v4272_v14 = vld [vmem:[%s4544_s19 + $0x40] sm:$0xff]  }
 0x3e0   : > { %v4273_v16 = vld [vmem:[%s4544_s19 + $0x48] sm:$0xff]  }
 0x3e1   : > { %v1225_v17 = vpack.c.bf16 %v1224_v15, %v1224_v15  ;;  %v4274_v15 = vld [vmem:[%s4583_s28 + $0xc0] sm:$0xff]  }
 0x3e2   : > { %3922 = vmatpush3.bf16.msra.mxu1 %v4274_v15 }
 0x3e3   : > { %3890 = vmatmul.mubr.bf16.vlgmr.msra.gmra.mrb[16].mxu0 %v1225_v17  ;;  %v4275_v17 = vld [vmem:[%s4583_s28 + $0xc8] sm:$0xff]   ;;  %3923 = vmatprep.subr.bf16.mxu1 %v4421_v0 }
 0x3e4   : > { %3917 = vmatprep.mubr.msk.bf16.mxu0 %vm4422_vm0, %v4421_v0  ;;  %3902 = vmatpush3.bf16.msra.mxu0 %v4264_v28  ;;  %v1453_v31 = vpop.f32.mrb[16].mxu1 }
 0x3e5   : > { %3903 = vmatprep.subr.bf16.mxu0 %v4421_v0  ;;  %v3899_v32 = vpop.f32.mrb[17].mxu1  ;;  %v1454_v41 = vadd.f32 %v1453_v31, %v1406_v39  ;;  %v4281_v39 = vld [vmem:[%s4583_s28 + $0xf8] sm:$0xff]  }
 0x3e6   : > { %v1456_v33 = vpop.f32.mrb[18].mxu1  ;;  %3924 = vmatpush3.bf16.msra.mxu1 %v4275_v17 }
 0x3e7   : > { %v3900_v34 = vpop.f32.mrb[19].mxu1  ;;  %v1459_v43 = vmax.f32 %v1454_v41, 0.0  ;;  %3925 = vmatprep.subr.bf16.mxu1 %v4421_v0  ;;  %v4282_v41 = vld [vmem:[%s4564_s15 + $0x100] sm:$0xff]  }
 0x3e8   : > { %3904 = vmatpush3.bf16.msra.mxu0 %v4265_v29  ;;  %v1464_v34 = vrot.slane %v4785_v38, %v4640_v35 }
 0x3e9   : > { %3905 = vmatprep.subr.bf16.mxu0 %v4421_v0  ;;  %v1460_v45 = vpack.c.bf16 %v1459_v43, %v1459_v43 }
 0x3ea   : > { %3926 = vmatpush3.bf16.msra.mxu1 %v4276_v18 }
 0x3eb   : > { %3927 = vmatprep.subr.bf16.mxu1 %v4421_v0 }
 0x3ec   : > { %3906 = vmatpush3.bf16.msra.mxu0 %v4266_v30 }
 0x3ed   : > { %3907 = vmatprep.subr.bf16.mxu0 %v4421_v0 }
 0x3ee   : > { %3928 = vmatpush3.bf16.msra.mxu1 %v4277_v22 }
 0x3ef   : > { %3929 = vmatprep.subr.bf16.mxu1 %v4421_v0 }
 0x3f0   : > { %3908 = vmatpush3.bf16.msra.mxu0 %v4267_v36 }
 0x3f1   : > { %3909 = vmatprep.subr.bf16.mxu0 %v4421_v0 }
 0x3f4   : > { %3910 = vmatpush3.bf16.msra.mxu0 %v4268_v37 }
 0x3f5   : > { %3911 = vmatprep.subr.bf16.mxu0 %v4421_v0 }
 0x3f8   : > { %3912 = vmatpush3.bf16.msra.mxu0 %v4269_v40 }
 0x3f9   : > { %3913 = vmatprep.subr.bf16.mxu0 %v4421_v0 }
 0x3fc   : > { %3914 = vmatpush3.bf16.msra.mxu0 %v4270_v42  ;;  %v4283_v42 = vld [vmem:[%s4564_s15 + $0x108] sm:$0xff]  }
 0x3fd   : > { %3915 = vmatprep.subr.bf16.mxu0 %v4421_v0 }
 0x400   : > { %3916 = vmatpush3.bf16.msra.mxu0 %v4271_v44 }
 0x401   : > { %3941 = vmatprep.subr.bf16.mxu0 %v4421_v0 }
 0x403   : > { %3918 = vmatmul.mubr.bf16.vlgmr.msra.gmra.mrb[20].mxu0 %v1460_v45 }
 0x404   : > { %3945 = vmatprep.mubr.msk.bf16.mxu0 %vm4422_vm0, %v4421_v0  ;;  %3942 = vmatpush3.bf16.msra.mxu0 %v4272_v14 }
 0x405   : > { %3943 = vmatprep.subr.bf16.mxu0 %v4421_v0 }
 0x408   : > { %3944 = vmatpush3.bf16.msra.mxu0 %v4273_v16 }
 0x409   : > { %3969 = vmatprep.subr.bf16.mxu0 %v4421_v0 }
 0x40b   : > { %3946 = vmatmul.mubr.msk.bf16.vlgmr.msra.gmra.mrb[24].mxu0 %vm427_vm1, %v4572_v5 }
 0x40c   : > { %3985 = vmatprep.mubr.msk.bf16.mxu0 %vm4422_vm0, %v4421_v0 }
 0x428   : > { %v682_v23 = vpop.xlane.xlu0 %681 }
 0x429   : > { %vm683_vm6 = vcmp.eq.f32.partialorder %v680_v20, %v682_v23  ;;  %v688_v46 = vcvt.f32.s32 %v682_v23  ;;  %v4278_v23 = vld [vmem:[%s4583_s28 + $0xe0] sm:$0xff]  }
 0x42a   : > { %v684_v26 = vsel %vm683_vm6, %v679_v25, inf  ;;  %3930 = vmatpush3.bf16.msra.mxu1 %v4278_v23  ;;  %v4280_v25 = vld [vmem:[%s4583_s28 + $0xf0] sm:$0xff]  }
 0x42b   : > { %685 = vmin.xlane.f32.xlu1 %v684_v26  ;;  %v689_v48 = vshll.u32 %v688_v46, 16  ;;  %3931 = vmatprep.subr.bf16.mxu1 %v4421_v0  ;;  %v4284_v46 = vld [vmem:[%s4564_s15 + $0x110] sm:$0xff]  }
 0x42f   : > { %992 = vmax.xlane.f32.xlu1 %v991_v27 }
 0x4b6   : > { %v1314_v1 = vpop.f32.mrb[16].mxu0 }
 0x4b7   : > { %v3891_v2 = vpop.f32.mrb[17].mxu0  ;;  %v4807_v12 = vadd.f32 %v3276_v11, %v1314_v1 }
 0x4b8   : > { %v686_v47 = vpop.xlane.xlu1 %685  ;;  %v1317_v3 = vpop.f32.mrb[18].mxu0 }
 0x4b9   : > { %v687_v49 = vcvt.f32.s32 %v686_v47  ;;  %v3892_v4 = vpop.f32.mrb[19].mxu0  ;;  %v1320_v13 = vsel %vm661_vm2, %v4807_v12, -inf  ;;  %v4285_v47 = vld [vmem:[%s4564_s15 + $0x118] sm:$0xff]  }
 0x4bb   : > { %v690_v50 = vadd.s32 %v689_v48, %v687_v49  ;;  %v4286_v48 = vld [vmem:[%s4564_s15 + $0x120] sm:$0xff]   ;;  %v4848_v49 = vld [vmem:[%s4618_s10 + $0x8] sm:$0x3] }
 0x4bc   : > { %v993_v51 = vpop.xlane.xlu1 %992 }
 0x4bd   : > { %v691_v53 = vrot.slane %v690_v50, 4  ;;  %v994_v55 = vrot.slane %v993_v51, 4 }
 0x4bf   : > { %vm692_vm7 = vcmp.lt.s32.totalorder %v690_v50, %v691_v53  ;;  %v995_v19 = vmax.f32 %v993_v51, %v994_v55  ;;  %v4287_v51 = vld [vmem:[%s4564_s15 + $0x128] sm:$0xff]   ;;  %v4288_v55 = vld [vmem:[%s4564_s15 + $0x130] sm:$0xff]  }
 0x4c0   : > { %v693_v56 = vsel %vm692_vm7, %v690_v50, %v691_v53  ;;  %v1735_v50 = vrot.slane %v4848_v49, %v4621_v21 }
 0x4c1   : > { %v996_v57 = vrot.slane %v995_v19, 2  ;;  %v694_v20 = vrot.slane %v693_v56, 2 }
 0x4c3   : > { %vm695_vm8 = vcmp.lt.s32.totalorder %v693_v56, %v694_v20  ;;  %v997_v58 = vmax.f32 %v995_v19, %v996_v57 }
 0x4c4   : > { %v696_v59 = vsel %vm695_vm8, %v693_v56, %v694_v20  ;;  %v4289_v56 = vld [vmem:[%s4564_s15 + $0x138] sm:$0xff]  }
 0x4c5   : > { %v697_v60 = vrot.slane %v696_v59, 1  ;;  %v998_v61 = vrot.slane %v997_v58, 1 }
 0x4c7   : > { %vm698_vm9 = vcmp.lt.s32.totalorder %v696_v59, %v697_v60  ;;  %v999_v62 = vmax.f32 %v997_v58, %v998_v61 }
 0x4c8   : > { %v699_v63 = vsel %vm698_vm9, %v696_v59, %v697_v60 }
 0x4c9   : > { %4135 = vpush %v699_v63 }
 0x4ca   : > { %4137 = vpush %v999_v62 }
 0x4d6   : > { %v1547_v26 = vpop.f32.mrb[20].mxu0 }
 0x4d7   : > { %v3919_v27 = vpop.f32.mrb[21].mxu0  ;;  %v1548_v36 = vadd.f32 %v1547_v26, %v1464_v34  ;;  %v4293_v34 = vld [vmem:[%s4583_s28 + $0x108] sm:$0xff]  }
 0x4d8   : > { %v1550_v28 = vpop.f32.mrb[22].mxu0 }
 0x4d9   : > { %v3920_v29 = vpop.f32.mrb[23].mxu0  ;;  %v1553_v37 = vmax.f32 %v1548_v36, 0.0  ;;  %v4294_v36 = vld [vmem:[%s4583_s28 + $0x110] sm:$0xff]  }
 0x4db   : > { %v1554_v40 = vpack.c.bf16 %v1553_v37, %v1553_v37  ;;  %v4295_v37 = vld [vmem:[%s4583_s28 + $0x118] sm:$0xff]  }
 0x4de   : > { %v1782_v43 = vpop.f32.mrb[24].mxu0 }
 0x4df   : > { %v3947_v38 = vpop.f32.mrb[25].mxu0  ;;  %v1783_v53 = vadd.f32 %v1782_v43, %v1735_v50  ;;  %v1793_v43 = vrot.slane %v4848_v49, %v4640_v35 }
 0x4e0   : > { %v1785_v44 = vpop.f32.mrb[26].mxu0 }
 0x4e1   : > { %v3948_v45 = vpop.f32.mrb[27].mxu0  ;;  %v1788_v19 = vmax.f32 %v1783_v53, 0.0 }
 0x4e3   : > { %v1789_v57 = vpack.c.bf16 %v1788_v19, %v1788_v19  ;;  %v4300_v19 = vld [vmem:[%s4564_s15 + $0x140] sm:$0xff]  }
 0x4fa   : > { %s4799_s12 = spop %4135 }
 0x4fb   : > { %s4138_s24 = spop %4137  ;;  %v701_v14 = vstv %s4799_s12 }
 0x4fc   : > { %v1001_v6 = vstv %s4138_s24 }
 0x4fd   : > { %vm1002_vm10 = vcmp.eq.f32.partialorder %v4772_v24, %v1001_v6  ;;  %v4279_v24 = vld [vmem:[%s4583_s28 + $0xe8] sm:$0xff]  }
 0x4fe   : > { %vm1003_vm11 = vmand %vm1002_vm10, %vm372_vm3  ;;  %3932 = vmatpush3.bf16.msra.mxu1 %v4279_v24 }
 0x4ff   : > { %v1004_v7 = vsel %vm1003_vm11, %v4735_v54, 64  ;;  %3933 = vmatprep.subr.bf16.mxu1 %v4421_v0  ;;  %vm3007_vm11 = vcmask 1041408  }
 0x500   : > { %v1005_v8 = vsel %vm661_vm2, %v1004_v7, 2147483647 }
 0x501   : > { %v1007_v9 = vshra.s32 %v1005_v8, 16  ;;  %v1006_v30 = vand.u32 65535, %v1005_v8 }
 0x502   : > { %3934 = vmatpush3.bf16.msra.mxu1 %v4280_v25  ;;  %v3334_v25 = vld [vmem:[%s4696_s17 + $0x3] ss:$0 sm:$0xff] }
 0x503   : > { %v1009_v10 = vcvt.s32.f32 %v1007_v9  ;;  %3935 = vmatprep.subr.bf16.mxu1 %v4421_v0  ;;  %v1008_v32 = vcvt.s32.f32 %v1006_v30 }
 0x505   : > { %1010 = vmin.xlane.f32.xlu0 %v1009_v10 }
 0x506   : > { %3936 = vmatpush3.bf16.msra.mxu1 %v4281_v39  ;;  %v4296_v39 = vld [vmem:[%s4583_s28 + $0x120] sm:$0xff]  }
 0x507   : > { %3949 = vmatprep.subr.bf16.mxu1 %v4421_v0 }
 0x509   : > { %1321 = vmax.xlane.f32.xlu0 %v1320_v13  ;;  %3938 = vmatmul.mubr.bf16.vlgmr.msra.gmra.mrb[20].mxu1 %v1554_v40  ;;  %v4297_v40 = vld [vmem:[%s4583_s28 + $0x128] sm:$0xff]  }
 0x50a   : > { %3965 = vmatprep.mubr.msk.bf16.mxu1 %vm4422_vm0, %v4421_v0  ;;  %3950 = vmatpush3.bf16.msra.mxu1 %v4282_v41  ;;  %v4298_v41 = vld [vmem:[%s4583_s28 + $0x130] sm:$0xff]  }
 0x50b   : > { %3951 = vmatprep.subr.bf16.mxu1 %v4421_v0 }
 0x50e   : > { %3952 = vmatpush3.bf16.msra.mxu1 %v4283_v42  ;;  %v4299_v42 = vld [vmem:[%s4583_s28 + $0x138] sm:$0xff]  }
 0x50f   : > { %3953 = vmatprep.subr.bf16.mxu1 %v4421_v0 }
 0x512   : > { %3954 = vmatpush3.bf16.msra.mxu1 %v4284_v46 }
 0x513   : > { %3955 = vmatprep.subr.bf16.mxu1 %v4421_v0 }
 0x516   : > { %3956 = vmatpush3.bf16.msra.mxu1 %v4285_v47 }
 0x517   : > { %3957 = vmatprep.subr.bf16.mxu1 %v4421_v0 }
 0x51a   : > { %3958 = vmatpush3.bf16.msra.mxu1 %v4286_v48 }
 0x51b   : > { %3959 = vmatprep.subr.bf16.mxu1 %v4421_v0 }
 0x51e   : > { %3960 = vmatpush3.bf16.msra.mxu1 %v4287_v51 }
 0x51f   : > { %3961 = vmatprep.subr.bf16.mxu1 %v4421_v0 }
 0x522   : > { %3962 = vmatpush3.bf16.msra.mxu1 %v4288_v55 }
 0x523   : > { %3963 = vmatprep.subr.bf16.mxu1 %v4421_v0 }
 0x526   : > { %3964 = vmatpush3.bf16.msra.mxu1 %v4289_v56  ;;  %v4301_v56 = vld [vmem:[%s4564_s15 + $0x148] sm:$0xff]  }
 0x527   : > { %3989 = vmatprep.subr.bf16.mxu1 %v4421_v0 }
 0x529   : > { %3966 = vmatmul.mubr.bf16.vlgmr.msra.gmra.mrb[24].mxu1 %v1789_v57 }
 0x52a   : > { %3993 = vmatprep.mubr.msk.bf16.mxu1 %vm4422_vm0, %v4421_v0 }
 0x592   : > { %v1011_v31 = vpop.xlane.xlu0 %1010 }
 0x593   : > { %vm1012_vm12 = vcmp.eq.f32.partialorder %v1009_v10, %v1011_v31  ;;  %v1017_v59 = vcvt.f32.s32 %v1011_v31  ;;  %v4290_v31 = vld [vmem:[%s4544_s19 + $0x50] sm:$0xff]  }
 0x594   : > { %v1013_v33 = vsel %vm1012_vm12, %v1008_v32, inf  ;;  %v4292_v32 = vld [vmem:[%s4583_s28 + $0x100] sm:$0xff]   ;;  %3990 = vmatpush3.bf16.msra.mxu1 %v4290_v31 }
 0x595   : > { %1014 = vmin.xlane.f32.xlu1 %v1013_v33  ;;  %v1018_v62 = vshll.u32 %v1017_v59, 16  ;;  %v4291_v33 = vld [vmem:[%s4544_s19 + $0x58] sm:$0xff]   ;;  %3970 = vmatpush3.bf16.msra.mxu0 %v4292_v32 }
 0x596   : > { %v1322_v20 = vpop.xlane.xlu0 %1321  ;;  %3991 = vmatprep.subr.bf16.mxu1 %v4421_v0  ;;  %3971 = vmatprep.subr.bf16.mxu0 %v4421_v0 }
 0x597   : > { %v1323_v58 = vrot.slane %v1322_v20, 4 }
 0x598   : > { %3992 = vmatpush3.bf16.msra.mxu1 %v4291_v33 }
 0x599   : > { %v1324_v60 = vmax.f32 %v1322_v20, %v1323_v58  ;;  %3972 = vmatpush3.bf16.msra.mxu0 %v4293_v34  ;;  %4017 = vmatprep.subr.bf16.mxu1 %v4421_v0 }
 0x59a   : > { %3973 = vmatprep.subr.bf16.mxu0 %v4421_v0 }
 0x59b   : > { %v1325_v2 = vrot.slane %v1324_v60, 2  ;;  %3994 = vmatmul.mubr.msk.bf16.vlgmr.msra.gmra.mrb[28].mxu1 %vm427_vm1, %v4572_v5 }
 0x59c   : > { %4033 = vmatprep.mubr.msk.bf16.mxu1 %vm4422_vm0, %v4421_v0 }
 0x59d   : > { %v1326_v6 = vmax.f32 %v1324_v60, %v1325_v2  ;;  %3974 = vmatpush3.bf16.msra.mxu0 %v4294_v36  ;;  %v4302_v60 = vld [vmem:[%s4564_s15 + $0x150] sm:$0xff]   ;;  %v4305_v2 = vld [vmem:[%s4564_s15 + $0x168] sm:$0xff]  }
 0x59e   : > { %3975 = vmatprep.subr.bf16.mxu0 %v4421_v0 }
 0x59f   : > { %v1327_v9 = vrot.slane %v1326_v6, 1 }
 0x5a1   : > { %v1328_v13 = vmax.f32 %v1326_v6, %v1327_v9  ;;  %3976 = vmatpush3.bf16.msra.mxu0 %v4295_v37 }
 0x5a2   : > { %3977 = vmatprep.subr.bf16.mxu0 %v4421_v0 }
 0x5a5   : > { %3978 = vmatpush3.bf16.msra.mxu0 %v4296_v39 }
 0x5a6   : > { %3979 = vmatprep.subr.bf16.mxu0 %v4421_v0 }
 0x5a9   : > { %3980 = vmatpush3.bf16.msra.mxu0 %v4297_v40 }
 0x5aa   : > { %3981 = vmatprep.subr.bf16.mxu0 %v4421_v0 }
 0x5ad   : > { %3982 = vmatpush3.bf16.msra.mxu0 %v4298_v41 }
 0x5ae   : > { %3983 = vmatprep.subr.bf16.mxu0 %v4421_v0 }
 0x5b1   : > { %3984 = vmatpush3.bf16.msra.mxu0 %v4299_v42 }
 0x5b2   : > { %3997 = vmatprep.subr.bf16.mxu0 %v4421_v0 }
 0x5dc   : > { %v1643_v26 = vpop.f32.mrb[20].mxu1 }
 0x5dd   : > { %v4871_v27 = vadd.f32 %v3334_v25, %v1643_v26  ;;  %v3939_v28 = vpop.f32.mrb[21].mxu1 }
 0x5df   : > { %v1649_v30 = vsel %vm661_vm2, %v4871_v27, -inf }
 0x622   : > { %v1015_v61 = vpop.xlane.xlu1 %1014 }
 0x623   : > { %v1016_v63 = vcvt.f32.s32 %v1015_v61  ;;  %v4303_v61 = vld [vmem:[%s4564_s15 + $0x158] sm:$0xff]  }
 0x625   : > { %v1019_v1 = vadd.s32 %v1018_v62, %v1016_v63  ;;  %v4304_v62 = vld [vmem:[%s4564_s15 + $0x160] sm:$0xff]   ;;  %v4912_v63 = vld [vmem:[%s4618_s10 + $0xa] sm:$0x3] }
 0x627   : > { %v1020_v3 = vrot.slane %v1019_v1, 4 }
 0x629   : > { %vm1021_vm13 = vcmp.lt.s32.totalorder %v1019_v1, %v1020_v3 }
 0x62a   : > { %v1022_v4 = vsel %vm1021_vm13, %v1019_v1, %v1020_v3  ;;  %v2064_v1 = vrot.slane %v4912_v63, %v4621_v21 }
 0x62b   : > { %v1023_v7 = vrot.slane %v1022_v4, 2 }
 0x62d   : > { %vm1024_vm14 = vcmp.lt.s32.totalorder %v1022_v4, %v1023_v7 }
 0x62e   : > { %v1025_v8 = vsel %vm1024_vm14, %v1022_v4, %v1023_v7  ;;  %v4306_v4 = vld [vmem:[%s4564_s15 + $0x170] sm:$0xff]   ;;  %v4307_v7 = vld [vmem:[%s4564_s15 + $0x178] sm:$0xff]  }
 0x62f   : > { %v1026_v10 = vrot.slane %v1025_v8, 1 }
 0x631   : > { %vm1027_vm15 = vcmp.lt.s32.totalorder %v1025_v8, %v1026_v10 }
 0x632   : > { %v1028_v11 = vsel %vm1027_vm15, %v1025_v8, %v1026_v10 }
 0x633   : > { %4139 = vpush %v1028_v11 }
 0x634   : > { %4141 = vpush %v1328_v13 }
 0x664   : > { %s4140_s30 = spop %4139 }
 0x665   : > { %v1030_v15 = vstv %s4140_s30  ;;  %s4142_s14 = spop %4141 }
 0x666   : > { %v4863_v16 = vsel %vm3005_vm4, %v701_v14, %v1030_v15  ;;  %v1330_v17 = vstv %s4142_s14 }
 0x667   : > { %vm1331_vm5 = vcmp.eq.f32.partialorder %v4807_v12, %v1330_v17  ;;  %v1646_v12 = vpop.f32.mrb[22].mxu1 }
 0x668   : > { %vm1332_vm6 = vmand %vm1331_vm5, %vm372_vm3  ;;  %v3940_v29 = vpop.f32.mrb[23].mxu1 }
 0x669   : > { %v1333_v18 = vsel %vm1332_vm6, %v4735_v54, 64  ;;  %v1876_v38 = vpop.f32.mrb[24].mxu1  ;;  %vm3009_vm6 = vcmask 1042432  }
 0x66a   : > { %v1334_v22 = vsel %vm661_vm2, %v1333_v18, 2147483647  ;;  %v1877_v44 = vadd.f32 %v1876_v38, %v1793_v43  ;;  %v3967_v45 = vpop.f32.mrb[25].mxu1 }
 0x66b   : > { %v1336_v23 = vshra.s32 %v1334_v22, 16  ;;  %v1879_v46 = vpop.f32.mrb[26].mxu1  ;;  %v1335_v51 = vand.u32 65535, %v1334_v22 }
 0x66c   : > { %v1882_v47 = vmax.f32 %v1877_v44, 0.0  ;;  %v3968_v48 = vpop.f32.mrb[27].mxu1  ;;  %v3392_v44 = vld [vmem:[%s4696_s17 + $0x4] ss:$0 sm:$0xff] }
 0x66d   : > { %v1338_v24 = vcvt.s32.f32 %v1336_v23  ;;  %v1337_v55 = vcvt.s32.f32 %v1335_v51  ;;  %v4310_v46 = vld [vmem:[%s4583_s28 + $0x140] sm:$0xff]   ;;  %v4311_v48 = vld [vmem:[%s4583_s28 + $0x148] sm:$0xff]   ;;  %v4313_v51 = vld [vmem:[%s4583_s28 + $0x158] sm:$0xff]  }
 0x66e   : > { %v1883_v50 = vpack.c.bf16 %v1882_v47, %v1882_v47  ;;  %v2111_v57 = vpop.f32.mrb[28].mxu1  ;;  %v4309_v47 = vld [vmem:[%s4544_s19 + $0x68] sm:$0xff]   ;;  %4018 = vmatpush3.bf16.msra.mxu1 %v4310_v46 }
 0x66f   : > { %1339 = vmin.xlane.f32.xlu1 %v1338_v24  ;;  %v3995_v20 = vpop.f32.mrb[29].mxu1  ;;  %v2112_v3 = vadd.f32 %v2111_v57, %v2064_v1  ;;  %4019 = vmatprep.subr.bf16.mxu1 %v4421_v0 }
 0x670   : > { %3986 = vmatmul.mubr.bf16.vlgmr.msra.gmra.mrb[28].mxu0 %v1883_v50  ;;  %v2114_v58 = vpop.f32.mrb[30].mxu1  ;;  %v4312_v50 = vld [vmem:[%s4583_s28 + $0x150] sm:$0xff]  }
 0x671   : > { %4013 = vmatprep.mubr.msk.bf16.mxu0 %vm4422_vm0, %v4421_v0  ;;  %3998 = vmatpush3.bf16.msra.mxu0 %v4300_v19  ;;  %v3996_v59 = vpop.f32.mrb[31].mxu1  ;;  %v2117_v6 = vmax.f32 %v2112_v3, 0.0  ;;  %v4317_v3 = vld [vmem:[%s4583_s28 + $0x178] sm:$0xff]  }
 0x672   : > { %3999 = vmatprep.subr.bf16.mxu0 %v4421_v0  ;;  %4020 = vmatpush3.bf16.msra.mxu1 %v4311_v48 }
 0x673   : > { %1650 = vmax.xlane.f32.xlu1 %v1649_v30  ;;  %v2118_v8 = vpack.c.bf16 %v2117_v6, %v2117_v6  ;;  %4021 = vmatprep.subr.bf16.mxu1 %v4421_v0  ;;  %v4318_v6 = vld [vmem:[%s4564_s15 + $0x180] sm:$0xff]  }
 0x675   : > { %4000 = vmatpush3.bf16.msra.mxu0 %v4301_v56 }
 0x676   : > { %4001 = vmatprep.subr.bf16.mxu0 %v4421_v0  ;;  %4022 = vmatpush3.bf16.msra.mxu1 %v4312_v50 }
 0x677   : > { %4023 = vmatprep.subr.bf16.mxu1 %v4421_v0 }
 0x679   : > { %4002 = vmatpush3.bf16.msra.mxu0 %v4302_v60 }
 0x67a   : > { %4003 = vmatprep.subr.bf16.mxu0 %v4421_v0  ;;  %4024 = vmatpush3.bf16.msra.mxu1 %v4313_v51 }
 0x67b   : > { %4025 = vmatprep.subr.bf16.mxu1 %v4421_v0 }
 0x67d   : > { %4004 = vmatpush3.bf16.msra.mxu0 %v4303_v61 }
 0x67e   : > { %4005 = vmatprep.subr.bf16.mxu0 %v4421_v0 }
 0x681   : > { %4006 = vmatpush3.bf16.msra.mxu0 %v4304_v62  ;;  %v2122_v62 = vrot.slane %v4912_v63, %v4640_v35 }
 0x682   : > { %4007 = vmatprep.subr.bf16.mxu0 %v4421_v0 }
 0x685   : > { %4008 = vmatpush3.bf16.msra.mxu0 %v4305_v2 }
 0x686   : > { %4009 = vmatprep.subr.bf16.mxu0 %v4421_v0 }
 0x689   : > { %4010 = vmatpush3.bf16.msra.mxu0 %v4306_v4 }
 0x68a   : > { %4011 = vmatprep.subr.bf16.mxu0 %v4421_v0 }
 0x68d   : > { %4012 = vmatpush3.bf16.msra.mxu0 %v4307_v7  ;;  %v4319_v7 = vld [vmem:[%s4564_s15 + $0x188] sm:$0xff]  }
 0x68e   : > { %4037 = vmatprep.subr.bf16.mxu0 %v4421_v0 }
 0x690   : > { %4014 = vmatmul.mubr.bf16.vlgmr.msra.gmra.mrb[32].mxu0 %v2118_v8 }
 0x691   : > { %4041 = vmatprep.mubr.msk.bf16.mxu0 %vm4422_vm0, %v4421_v0 }
 0x6fc   : > { %v1340_v53 = vpop.xlane.xlu1 %1339 }
 0x6fd   : > { %vm1341_vm7 = vcmp.eq.f32.partialorder %v1338_v24, %v1340_v53  ;;  %v1346_v11 = vcvt.f32.s32 %v1340_v53  ;;  %v4314_v53 = vld [vmem:[%s4583_s28 + $0x160] sm:$0xff]  }
 0x6fe   : > { %v1342_v49 = vsel %vm1341_vm7, %v1337_v55, inf  ;;  %4026 = vmatpush3.bf16.msra.mxu1 %v4314_v53  ;;  %v4315_v55 = vld [vmem:[%s4583_s28 + $0x168] sm:$0xff]  }
 0x6ff   : > { %1343 = vmin.xlane.f32.xlu0 %v1342_v49  ;;  %v1347_v15 = vshll.u32 %v1346_v11, 16  ;;  %4027 = vmatprep.subr.bf16.mxu1 %v4421_v0  ;;  %v4316_v49 = vld [vmem:[%s4583_s28 + $0x170] sm:$0xff]  }
 0x700   : > { %v1651_v9 = vpop.xlane.xlu1 %1650  ;;  %v4320_v11 = vld [vmem:[%s4564_s15 + $0x190] sm:$0xff]  }
 0x701   : > { %v1652_v10 = vrot.slane %v1651_v9, 4 }
 0x702   : > { %4028 = vmatpush3.bf16.msra.mxu1 %v4315_v55 }
 0x703   : > { %v1653_v13 = vmax.f32 %v1651_v9, %v1652_v10  ;;  %4029 = vmatprep.subr.bf16.mxu1 %v4421_v0 }
 0x705   : > { %v1654_v22 = vrot.slane %v1653_v13, 2 }
 0x706   : > { %4030 = vmatpush3.bf16.msra.mxu1 %v4316_v49  ;;  %v3450_v49 = vld [vmem:[%s4696_s17 + $0x5] ss:$0 sm:$0xff] }
 0x707   : > { %v1655_v25 = vmax.f32 %v1653_v13, %v1654_v22  ;;  %4031 = vmatprep.subr.bf16.mxu1 %v4421_v0  ;;  %v4321_v13 = vld [vmem:[%s4564_s15 + $0x198] sm:$0xff]  }
 0x709   : > { %v1656_v12 = vrot.slane %v1655_v25, 1 }
 0x70a   : > { %4032 = vmatpush3.bf16.msra.mxu1 %v4317_v3  ;;  %v4333_v3 = vld [vmem:[%s4583_s28 + $0x1a8] sm:$0xff]  }
 0x70b   : > { %v1657_v31 = vmax.f32 %v1655_v25, %v1656_v12  ;;  %4045 = vmatprep.subr.bf16.mxu1 %v4421_v0  ;;  %v4325_v25 = vld [vmem:[%s4564_s15 + $0x1b8] sm:$0xff]  }
 0x743   : > { %v1972_v32 = vpop.f32.mrb[28].mxu0 }
 0x744   : > { %v3987_v33 = vpop.f32.mrb[29].mxu0  ;;  %v4935_v45 = vadd.f32 %v3392_v44, %v1972_v32 }
 0x745   : > { %v1975_v34 = vpop.f32.mrb[30].mxu0 }
 0x746   : > { %v3988_v36 = vpop.f32.mrb[31].mxu0 }
 0x763   : > { %v2205_v19 = vpop.f32.mrb[32].mxu0 }
 0x764   : > { %v4015_v56 = vpop.f32.mrb[33].mxu0  ;;  %v2206_v1 = vadd.f32 %v2205_v19, %v2122_v62  ;;  %v4330_v62 = vld [vmem:[%s4583_s28 + $0x190] sm:$0xff]  }
 0x765   : > { %v2208_v57 = vpop.f32.mrb[34].mxu0 }
 0x766   : > { %v4016_v20 = vpop.f32.mrb[35].mxu0  ;;  %v2211_v2 = vmax.f32 %v2206_v1, 0.0  ;;  %v4331_v1 = vld [vmem:[%s4583_s28 + $0x198] sm:$0xff]  }
 0x768   : > { %v2212_v4 = vpack.c.bf16 %v2211_v2, %v2211_v2  ;;  %v4332_v2 = vld [vmem:[%s4583_s28 + $0x1a0] sm:$0xff]  }
 0x76a   : > { %4034 = vmatmul.mubr.bf16.vlgmr.msra.gmra.mrb[32].mxu1 %v2212_v4  ;;  %v4334_v4 = vld [vmem:[%s4583_s28 + $0x1b0] sm:$0xff]  }
 0x76b   : > { %4061 = vmatprep.mubr.msk.bf16.mxu1 %vm4422_vm0, %v4421_v0  ;;  %4046 = vmatpush3.bf16.msra.mxu1 %v4318_v6 }
 0x76c   : > { %4047 = vmatprep.subr.bf16.mxu1 %v4421_v0 }
 0x76f   : > { %4048 = vmatpush3.bf16.msra.mxu1 %v4319_v7 }
 0x770   : > { %4049 = vmatprep.subr.bf16.mxu1 %v4421_v0 }
 0x773   : > { %4050 = vmatpush3.bf16.msra.mxu1 %v4320_v11 }
 0x774   : > { %4051 = vmatprep.subr.bf16.mxu1 %v4421_v0 }
 0x777   : > { %4052 = vmatpush3.bf16.msra.mxu1 %v4321_v13 }
 0x778   : > { %4053 = vmatprep.subr.bf16.mxu1 %v4421_v0 }
 0x78c   : > { %v1344_v14 = vpop.xlane.xlu0 %1343 }
 0x78d   : > { %v1345_v17 = vcvt.f32.s32 %v1344_v14  ;;  %v4322_v14 = vld [vmem:[%s4564_s15 + $0x1a0] sm:$0xff]  }
 0x78e   : > { %4054 = vmatpush3.bf16.msra.mxu1 %v4322_v14 }
 0x78f   : > { %v1348_v18 = vadd.s32 %v1347_v15, %v1345_v17  ;;  %v4976_v15 = vld [vmem:[%s4618_s10 + $0xc] sm:$0x3]  ;;  %4055 = vmatprep.subr.bf16.mxu1 %v4421_v0 }
 0x790   : > { %v2393_v17 = vrot.slane %v4976_v15, %v4621_v21  ;;  %v2451_v6 = vrot.slane %v4976_v15, %v4640_v35 }
 0x791   : > { %v1349_v23 = vrot.slane %v1348_v18, 4 }
 0x793   : > { %vm1350_vm8 = vcmp.lt.s32.totalorder %v1348_v18, %v1349_v23 }
 0x794   : > { %v1351_v24 = vsel %vm1350_vm8, %v1348_v18, %v1349_v23  ;;  %v4323_v18 = vld [vmem:[%s4564_s15 + $0x1a8] sm:$0xff]   ;;  %v4324_v23 = vld [vmem:[%s4564_s15 + $0x1b0] sm:$0xff]  }
 0x795   : > { %v1352_v26 = vrot.slane %v1351_v24, 2  ;;  %4056 = vmatpush3.bf16.msra.mxu1 %v4323_v18 }
 0x796   : > { %4057 = vmatprep.subr.bf16.mxu1 %v4421_v0 }
 0x797   : > { %vm1353_vm9 = vcmp.lt.s32.totalorder %v1351_v24, %v1352_v26 }
 0x798   : > { %v1354_v28 = vsel %vm1353_vm9, %v1351_v24, %v1352_v26 }
 0x799   : > { %v1355_v29 = vrot.slane %v1354_v28, 1  ;;  %4058 = vmatpush3.bf16.msra.mxu1 %v4324_v23  ;;  %v4337_v23 = vld [vmem:[%s4564_s15 + $0x1c8] sm:$0xff]  }
 0x79a   : > { %4059 = vmatprep.subr.bf16.mxu1 %v4421_v0 }
 0x79b   : > { %vm1356_vm10 = vcmp.lt.s32.totalorder %v1354_v28, %v1355_v29 }
 0x79c   : > { %v1357_v30 = vsel %vm1356_vm10, %v1354_v28, %v1355_v29 }
 0x79d   : > { %4143 = vpush %v1357_v30  ;;  %4060 = vmatpush3.bf16.msra.mxu1 %v4325_v25 }
 0x79e   : > { %4145 = vpush %v1657_v31  ;;  %4085 = vmatprep.subr.bf16.mxu1 %v4421_v0 }
 0x7ce   : > { %s4144_s16 = spop %4143 }
 0x7cf   : > { %v1359_v37 = vstv %s4144_s16  ;;  %s4146_s20 = spop %4145 }
 0x7d0   : > { %v4927_v39 = vsel %vm3007_vm11, %v4863_v16, %v1359_v37  ;;  %v1659_v40 = vstv %s4146_s20  ;;  %v1978_v16 = vsel %vm661_vm2, %v4935_v45, -inf  ;;  %vm3011_vm11 = vcmask 1043456  }
 0x7d1   : > { %vm1660_vm12 = vcmp.eq.f32.partialorder %v4871_v27, %v1659_v40  ;;  %v4308_v27 = vld [vmem:[%s4544_s19 + $0x60] sm:$0xff]  }
 0x7d2   : > { %vm1661_vm13 = vmand %vm1660_vm12, %vm372_vm3  ;;  %4038 = vmatpush3.bf16.msra.mxu0 %v4308_v27 }
 0x7d3   : > { %v1662_v41 = vsel %vm1661_vm13, %v4735_v54, 64  ;;  %4039 = vmatprep.subr.bf16.mxu0 %v4421_v0 }
 0x7d4   : > { %v1663_v42 = vsel %vm661_vm2, %v1662_v41, 2147483647 }
 0x7d5   : > { %v1665_v43 = vshra.s32 %v1663_v42, 16  ;;  %v1664_v58 = vand.u32 65535, %v1663_v42 }
 0x7d6   : > { %4040 = vmatpush3.bf16.msra.mxu0 %v4309_v47 }
 0x7d7   : > { %v1667_v38 = vcvt.s32.f32 %v1665_v43  ;;  %4065 = vmatprep.subr.bf16.mxu0 %v4421_v0  ;;  %v1666_v60 = vcvt.s32.f32 %v1664_v58  ;;  %v4326_v58 = vld [vmem:[%s4544_s19 + $0x70] sm:$0xff]  }
 0x7d9   : > { %1668 = vmin.xlane.f32.xlu0 %v1667_v38  ;;  %4042 = vmatmul.mubr.msk.bf16.vlgmr.msra.gmra.mrb[36].mxu0 %vm427_vm1, %v4572_v5 }
 0x7da   : > { %4081 = vmatprep.mubr.msk.bf16.mxu0 %vm4422_vm0, %v4421_v0 }
 0x7dd   : > { %1979 = vmax.xlane.f32.xlu0 %v1978_v16 }
 0x866   : > { %v1669_v59 = vpop.xlane.xlu0 %1668 }
 0x867   : > { %vm1670_vm14 = vcmp.eq.f32.partialorder %v1667_v38, %v1669_v59  ;;  %v1675_v29 = vcvt.f32.s32 %v1669_v59  ;;  %v4328_v59 = vld [vmem:[%s4583_s28 + $0x180] sm:$0xff]  }
 0x868   : > { %v1671_v61 = vsel %vm1670_vm14, %v1666_v60, inf  ;;  %v4327_v60 = vld [vmem:[%s4544_s19 + $0x78] sm:$0xff]   ;;  %4066 = vmatpush3.bf16.msra.mxu0 %v4328_v59 }
 0x869   : > { %1672 = vmin.xlane.f32.xlu1 %v1671_v61  ;;  %v1676_v32 = vshll.u32 %v1675_v29, 16  ;;  %v4329_v61 = vld [vmem:[%s4583_s28 + $0x188] sm:$0xff]   ;;  %4067 = vmatprep.subr.bf16.mxu0 %v4421_v0  ;;  %v4339_v29 = vld [vmem:[%s4564_s15 + $0x1d8] sm:$0xff]  }
 0x86a   : > { %v1980_v28 = vpop.xlane.xlu0 %1979 }
 0x86b   : > { %v1981_v12 = vrot.slane %v1980_v28, 4 }
 0x86c   : > { %4068 = vmatpush3.bf16.msra.mxu0 %v4329_v61 }
 0x86d   : > { %v1982_v30 = vmax.f32 %v1980_v28, %v1981_v12  ;;  %4069 = vmatprep.subr.bf16.mxu0 %v4421_v0  ;;  %v4338_v12 = vld [vmem:[%s4564_s15 + $0x1d0] sm:$0xff]  }
 0x86f   : > { %v1983_v36 = vrot.slane %v1982_v30, 2 }
 0x870   : > { %4070 = vmatpush3.bf16.msra.mxu0 %v4330_v62 }
 0x871   : > { %v1984_v41 = vmax.f32 %v1982_v30, %v1983_v36  ;;  %4071 = vmatprep.subr.bf16.mxu0 %v4421_v0  ;;  %v4340_v30 = vld [vmem:[%s4564_s15 + $0x1e0] sm:$0xff]   ;;  %v4342_v36 = vld [vmem:[%s4564_s15 + $0x1f0] sm:$0xff]  }
 0x873   : > { %v1985_v38 = vrot.slane %v1984_v41, 1 }
 0x874   : > { %4072 = vmatpush3.bf16.msra.mxu0 %v4331_v1 }
 0x875   : > { %v1986_v27 = vmax.f32 %v1984_v41, %v1985_v38  ;;  %4073 = vmatprep.subr.bf16.mxu0 %v4421_v0 }
 0x878   : > { %4074 = vmatpush3.bf16.msra.mxu0 %v4332_v2 }
 0x879   : > { %4075 = vmatprep.subr.bf16.mxu0 %v4421_v0 }
 0x87c   : > { %4076 = vmatpush3.bf16.msra.mxu0 %v4333_v3 }
 0x87d   : > { %4077 = vmatprep.subr.bf16.mxu0 %v4421_v0 }
 0x880   : > { %4078 = vmatpush3.bf16.msra.mxu0 %v4334_v4 }
 0x881   : > { %4079 = vmatprep.subr.bf16.mxu0 %v4421_v0 }
 0x8ac   : > { %v2440_v8 = vpop.f32.mrb[36].mxu0 }
 0x8ad   : > { %v4043_v63 = vpop.f32.mrb[37].mxu0  ;;  %v2441_v22 = vadd.f32 %v2440_v8, %v2393_v17 }
 0x8ae   : > { %v2443_v9 = vpop.f32.mrb[38].mxu0 }
 0x8af   : > { %v4044_v10 = vpop.f32.mrb[39].mxu0  ;;  %v2446_v24 = vmax.f32 %v2441_v22, 0.0  ;;  %v4336_v22 = vld [vmem:[%s4564_s15 + $0x1c0] sm:$0xff]  }
 0x8b1   : > { %v2447_v26 = vpack.c.bf16 %v2446_v24, %v2446_v24 }
 0x8b3   : > { %4062 = vmatmul.mubr.bf16.vlgmr.msra.gmra.mrb[36].mxu1 %v2447_v26 }
 0x8b4   : > { %4089 = vmatprep.mubr.msk.bf16.mxu1 %vm4422_vm0, %v4421_v0  ;;  %4086 = vmatpush3.bf16.msra.mxu1 %v4326_v58 }
 0x8b5   : > { %4087 = vmatprep.subr.bf16.mxu1 %v4421_v0 }
 0x8b8   : > { %4088 = vmatpush3.bf16.msra.mxu1 %v4327_v60 }
 0x8b9   : > { %4113 = vmatprep.subr.bf16.mxu1 %v4421_v0 }
 0x8bb   : > { %4090 = vmatmul.mubr.msk.bf16.vlgmr.msra.gmra.mrb[40].mxu1 %vm427_vm1, %v4572_v5  ;;  %v4335_v5 = vld [vmem:[%s4583_s28 + $0x1b8] sm:$0xff]  }
 0x8bc   : > { %4129 = vmatprep.mubr.msk.bf16.mxu1 %vm4422_vm0, %v4421_v0  ;;  %4080 = vmatpush3.bf16.msra.mxu0 %v4335_v5 }
 0x8bd   : > { %4093 = vmatprep.subr.bf16.mxu0 %v4421_v0 }
 0x8f6   : > { %v1673_v31 = vpop.xlane.xlu1 %1672 }
 0x8f7   : > { %v1674_v33 = vcvt.f32.s32 %v1673_v31  ;;  %v5040_v31 = vld [vmem:[%s4618_s10 + $0xe] sm:$0x3]  ;;  %s3148_s10 = sshll.u32 %s5128_s25, 3 }
 0x8f9   : > { %v1677_v34 = vadd.s32 %v1676_v32, %v1674_v33  ;;  %v2722_v32 = vrot.slane %v5040_v31, %v4621_v21  ;;  %v4341_v33 = vld [vmem:[%s4564_s15 + $0x1e8] sm:$0xff]  }
 0x8fb   : > { %v1678_v37 = vrot.slane %v1677_v34, 4 }
 0x8fd   : > { %vm1679_vm15 = vcmp.lt.s32.totalorder %v1677_v34, %v1678_v37 }
 0x8fe   : > { %v1680_v40 = vsel %vm1679_vm15, %v1677_v34, %v1678_v37 }
 0x8ff   : > { %v1681_v42 = vrot.slane %v1680_v40, 2 }
 0x901   : > { %vm1682_vm4 = vcmp.lt.s32.totalorder %v1680_v40, %v1681_v42 }
 0x902   : > { %v1683_v43 = vsel %vm1682_vm4, %v1680_v40, %v1681_v42  ;;  %v4343_v40 = vld [vmem:[%s4564_s15 + $0x1f8] sm:$0xff]  }
 0x903   : > { %v1684_v44 = vrot.slane %v1683_v43, 1 }
 0x905   : > { %vm1685_vm5 = vcmp.lt.s32.totalorder %v1683_v43, %v1684_v44 }
 0x906   : > { %v1686_v16 = vsel %vm1685_vm5, %v1683_v43, %v1684_v44 }
 0x907   : > { %4147 = vpush %v1686_v16 }
 0x908   : > { %4149 = vpush %v1986_v27 }
 0x938   : > { %s4148_s21 = spop %4147 }
 0x939   : > { %v1688_v46 = vstv %s4148_s21  ;;  %s4150_s27 = spop %4149 }
 0x93a   : > { %v4991_v47 = vsel %vm3009_vm6, %v4927_v39, %v1688_v46  ;;  %v1988_v48 = vstv %s4150_s27  ;;  %v2301_v39 = vpop.f32.mrb[32].mxu1  ;;  %vm3013_vm6 = vcmask 1044480  }
 0x93b   : > { %vm1989_vm7 = vcmp.eq.f32.partialorder %v4935_v45, %v1988_v48  ;;  %v4999_v19 = vadd.f32 %v3450_v49, %v2301_v39  ;;  %v4035_v56 = vpop.f32.mrb[33].mxu1 }
 0x93c   : > { %vm1990_vm8 = vmand %vm1989_vm7, %vm372_vm3  ;;  %v2304_v45 = vpop.f32.mrb[34].mxu1 }
 0x93d   : > { %v1991_v50 = vsel %vm1990_vm8, %v4735_v54, 64  ;;  %v4036_v57 = vpop.f32.mrb[35].mxu1  ;;  %v2307_v20 = vsel %vm661_vm2, %v4999_v19, -inf }
 0x93e   : > { %v1992_v51 = vsel %vm661_vm2, %v1991_v50, 2147483647 }
 0x93f   : > { %v1994_v53 = vshra.s32 %v1992_v51, 16  ;;  %v1993_v14 = vand.u32 65535, %v1992_v51 }
 0x941   : > { %v1996_v55 = vcvt.s32.f32 %v1994_v53  ;;  %v1995_v18 = vcvt.s32.f32 %v1993_v14 }
 0x943   : > { %1997 = vmin.xlane.f32.xlu1 %v1996_v55 }
 0x947   : > { %2308 = vmax.xlane.f32.xlu1 %v2307_v20 }
 0x986   : > { %v2534_v7 = vpop.f32.mrb[36].mxu1 }
 0x987   : > { %v2535_v8 = vadd.f32 %v2534_v7, %v2451_v6  ;;  %v4063_v63 = vpop.f32.mrb[37].mxu1  ;;  %v3508_v6 = vld [vmem:[%s4696_s17 + $0x6] ss:$0 sm:$0xff] }
 0x988   : > { %v2537_v9 = vpop.f32.mrb[38].mxu1  ;;  %v4346_v63 = vld [vmem:[%s4583_s28 + $0x1d0] sm:$0xff]  }
 0x989   : > { %v2540_v10 = vmax.f32 %v2535_v8, 0.0  ;;  %v4064_v11 = vpop.f32.mrb[39].mxu1  ;;  %v4345_v8 = vld [vmem:[%s4583_s28 + $0x1c8] sm:$0xff]   ;;  %v4347_v9 = vld [vmem:[%s4583_s28 + $0x1d8] sm:$0xff]  }
 0x98a   : > { %v4349_v11 = vld [vmem:[%s4583_s28 + $0x1e8] sm:$0xff]  }
 0x98b   : > { %v2541_v13 = vpack.c.bf16 %v2540_v10, %v2540_v10  ;;  %v4348_v10 = vld [vmem:[%s4583_s28 + $0x1e0] sm:$0xff]  }
 0x98d   : > { %4082 = vmatmul.mubr.bf16.vlgmr.msra.gmra.mrb[40].mxu0 %v2541_v13  ;;  %v4350_v13 = vld [vmem:[%s4583_s28 + $0x1f0] sm:$0xff]  }
 0x98e   : > { %4109 = vmatprep.mubr.msk.bf16.mxu0 %vm4422_vm0, %v4421_v0  ;;  %4094 = vmatpush3.bf16.msra.mxu0 %v4336_v22  ;;  %v2769_v24 = vpop.f32.mrb[40].mxu1 }
 0x98f   : > { %4095 = vmatprep.subr.bf16.mxu0 %v4421_v0  ;;  %v4091_v25 = vpop.f32.mrb[41].mxu1  ;;  %v2770_v34 = vadd.f32 %v2769_v24, %v2722_v32 }
 0x990   : > { %v2772_v26 = vpop.f32.mrb[42].mxu1 }
 0x991   : > { %v4092_v28 = vpop.f32.mrb[43].mxu1  ;;  %v2775_v37 = vmax.f32 %v2770_v34, 0.0  ;;  %v2780_v26 = vrot.slane %v5040_v31, %v4640_v35 }
 0x992   : > { %4096 = vmatpush3.bf16.msra.mxu0 %v4337_v23 }
 0x993   : > { %4097 = vmatprep.subr.bf16.mxu0 %v4421_v0  ;;  %v2776_v41 = vpack.c.bf16 %v2775_v37, %v2775_v37 }
 0x996   : > { %4098 = vmatpush3.bf16.msra.mxu0 %v4338_v12 }
 0x997   : > { %4099 = vmatprep.subr.bf16.mxu0 %v4421_v0 }
 0x99a   : > { %4100 = vmatpush3.bf16.msra.mxu0 %v4339_v29  ;;  %v4351_v29 = vld [vmem:[%s4583_s28 + $0x1f8] sm:$0xff]  }
 0x99b   : > { %4101 = vmatprep.subr.bf16.mxu0 %v4421_v0 }
 0x99e   : > { %4102 = vmatpush3.bf16.msra.mxu0 %v4340_v30 }
 0x99f   : > { %4103 = vmatprep.subr.bf16.mxu0 %v4421_v0 }
 0x9a2   : > { %4104 = vmatpush3.bf16.msra.mxu0 %v4341_v33 }
 0x9a3   : > { %4105 = vmatprep.subr.bf16.mxu0 %v4421_v0 }
 0x9a6   : > { %4106 = vmatpush3.bf16.msra.mxu0 %v4342_v36 }
 0x9a7   : > { %4107 = vmatprep.subr.bf16.mxu0 %v4421_v0 }
 0x9aa   : > { %4108 = vmatpush3.bf16.msra.mxu0 %v4343_v40 }
 0x9ad   : > { %4110 = vmatmul.mubr.bf16.vlgmr.msra.gmra.mrb[44].mxu0 %v2776_v41 }
 0x9d0   : > { %v1998_v17 = vpop.xlane.xlu1 %1997 }
 0x9d1   : > { %vm1999_vm1 = vcmp.eq.f32.partialorder %v1996_v55, %v1998_v17  ;;  %v2004_v21 = vcvt.f32.s32 %v1998_v17 }
 0x9d2   : > { %v2000_v15 = vsel %vm1999_vm1, %v1995_v18, inf }
 0x9d3   : > { %2001 = vmin.xlane.f32.xlu0 %v2000_v15  ;;  %v2005_v16 = vshll.u32 %v2004_v21, 16 }
 0x9d4   : > { %v2309_v42 = vpop.xlane.xlu1 %2308 }
 0x9d5   : > { %v2310_v43 = vrot.slane %v2309_v42, 4 }
 0x9d7   : > { %v2311_v38 = vmax.f32 %v2309_v42, %v2310_v43 }
 0x9d9   : > { %v2312_v48 = vrot.slane %v2311_v38, 2 }
 0x9db   : > { %v2313_v53 = vmax.f32 %v2311_v38, %v2312_v48 }
 0x9dd   : > { %v2314_v39 = vrot.slane %v2313_v53, 1 }
 0x9df   : > { %v2315_v57 = vmax.f32 %v2313_v53, %v2314_v39 }
 0xa60   : > { %v2002_v44 = vpop.xlane.xlu0 %2001  ;;  %v2630_v20 = vpop.f32.mrb[40].mxu0 }
 0xa61   : > { %v2003_v27 = vcvt.f32.s32 %v2002_v44  ;;  %v4083_v58 = vpop.f32.mrb[41].mxu0  ;;  %v5060_v7 = vadd.f32 %v3508_v6, %v2630_v20 }
 0xa62   : > { %v2633_v59 = vpop.f32.mrb[42].mxu0 }
 0xa63   : > { %v2006_v46 = vadd.s32 %v2005_v16, %v2003_v27  ;;  %v4084_v60 = vpop.f32.mrb[43].mxu0 }
 0xa65   : > { %v2007_v50 = vrot.slane %v2006_v46, 4 }
 0xa67   : > { %vm2008_vm0 = vcmp.lt.s32.totalorder %v2006_v46, %v2007_v50 }
 0xa68   : > { %v2009_v51 = vsel %vm2008_vm0, %v2006_v46, %v2007_v50 }
 0xa69   : > { %v2010_v55 = vrot.slane %v2009_v51, 2 }
 0xa6b   : > { %vm2011_vm9 = vcmp.lt.s32.totalorder %v2009_v51, %v2010_v55 }
 0xa6c   : > { %v2012_v49 = vsel %vm2011_vm9, %v2009_v51, %v2010_v55 }
 0xa6d   : > { %v2013_v56 = vrot.slane %v2012_v49, 1 }
 0xa6f   : > { %vm2014_vm10 = vcmp.lt.s32.totalorder %v2012_v49, %v2013_v56 }
 0xa70   : > { %v2015_v45 = vsel %vm2014_vm10, %v2012_v49, %v2013_v56  ;;  %v3566_v56 = vld [vmem:[%s4696_s17 + $0x7] ss:$0 sm:$0xff]  ;;  %s362_s17 = scalar_lea.vmem %s5117_s6, %s3148_s10 }
 0xa71   : > { %4151 = vpush %v2015_v45 }
 0xa72   : > { %4153 = vpush %v2315_v57 }
 0xa80   : > { %v2863_v14 = vpop.f32.mrb[44].mxu0 }
 0xa81   : > { %v4111_v17 = vpop.f32.mrb[45].mxu0  ;;  %v2864_v28 = vadd.f32 %v2863_v14, %v2780_v26 }
 0xa82   : > { %v2866_v18 = vpop.f32.mrb[46].mxu0 }
 0xa83   : > { %v4112_v15 = vpop.f32.mrb[47].mxu0  ;;  %v2869_v12 = vmax.f32 %v2864_v28, 0.0 }
 0xa85   : > { %v2870_v30 = vpack.c.bf16 %v2869_v12, %v2869_v12 }
 0xaa2   : > { %s4152_s19 = spop %4151 }
 0xaa3   : > { %v2017_v61 = vstv %s4152_s19  ;;  %s4154_s15 = spop %4153 }
 0xaa4   : > { %v5052_v62 = vsel %vm3011_vm11, %v4991_v47, %v2017_v61  ;;  %v2317_v1 = vstv %s4154_s15  ;;  %v2636_v47 = vsel %vm661_vm2, %v5060_v7, -inf  ;;  %vm3015_vm11 = vcmask 1045504  }
 0xaa5   : > { %vm2318_vm12 = vcmp.eq.f32.partialorder %v4999_v19, %v2317_v1  ;;  %v4344_v19 = vld [vmem:[%s4583_s28 + $0x1c0] sm:$0xff]  }
 0xaa6   : > { %vm2319_vm13 = vmand %vm2318_vm12, %vm372_vm3  ;;  %4114 = vmatpush3.bf16.msra.mxu1 %v4344_v19 }
 0xaa7   : > { %v2320_v2 = vsel %vm2319_vm13, %v4735_v54, 64  ;;  %4115 = vmatprep.subr.bf16.mxu1 %v4421_v0 }
 0xaa8   : > { %v2321_v3 = vsel %vm661_vm2, %v2320_v2, 2147483647 }
 0xaa9   : > { %v2323_v4 = vshra.s32 %v2321_v3, 16  ;;  %v2322_v22 = vand.u32 65535, %v2321_v3 }
 0xaaa   : > { %4116 = vmatpush3.bf16.msra.mxu1 %v4345_v8 }
 0xaab   : > { %v2325_v5 = vcvt.s32.f32 %v2323_v4  ;;  %4117 = vmatprep.subr.bf16.mxu1 %v4421_v0  ;;  %v2324_v24 = vcvt.s32.f32 %v2322_v22 }
 0xaad   : > { %2326 = vmin.xlane.f32.xlu0 %v2325_v5 }
 0xaae   : > { %4118 = vmatpush3.bf16.msra.mxu1 %v4346_v63 }
 0xaaf   : > { %4119 = vmatprep.subr.bf16.mxu1 %v4421_v0 }
 0xab1   : > { %2637 = vmax.xlane.f32.xlu0 %v2636_v47 }
 0xab2   : > { %4120 = vmatpush3.bf16.msra.mxu1 %v4347_v9 }
 0xab3   : > { %4121 = vmatprep.subr.bf16.mxu1 %v4421_v0 }
 0xab6   : > { %4122 = vmatpush3.bf16.msra.mxu1 %v4348_v10 }
 0xab7   : > { %4123 = vmatprep.subr.bf16.mxu1 %v4421_v0 }
 0xaba   : > { %4124 = vmatpush3.bf16.msra.mxu1 %v4349_v11 }
 0xabb   : > { %4125 = vmatprep.subr.bf16.mxu1 %v4421_v0 }
 0xabe   : > { %4126 = vmatpush3.bf16.msra.mxu1 %v4350_v13 }
 0xabf   : > { %4127 = vmatprep.subr.bf16.mxu1 %v4421_v0 }
 0xac2   : > { %4128 = vmatpush3.bf16.msra.mxu1 %v4351_v29 }
 0xac5   : > { %4130 = vmatmul.mubr.bf16.vlgmr.msra.gmra.mrb[44].mxu1 %v2870_v30 }
 0xb3a   : > { %v2327_v23 = vpop.xlane.xlu0 %2326 }
 0xb3b   : > { %vm2328_vm14 = vcmp.eq.f32.partialorder %v2325_v5, %v2327_v23  ;;  %v2333_v33 = vcvt.f32.s32 %v2327_v23 }
 0xb3c   : > { %v2329_v25 = vsel %vm2328_vm14, %v2324_v24, inf }
 0xb3d   : > { %2330 = vmin.xlane.f32.xlu1 %v2329_v25  ;;  %v2334_v37 = vshll.u32 %v2333_v33, 16 }
 0xb3e   : > { %v2638_v0 = vpop.xlane.xlu0 %2637 }
 0xb3f   : > { %v2639_v32 = vrot.slane %v2638_v0, 4 }
 0xb41   : > { %v2640_v34 = vmax.f32 %v2638_v0, %v2639_v32 }
 0xb43   : > { %v2641_v42 = vrot.slane %v2640_v34, 2 }
 0xb45   : > { %v2642_v38 = vmax.f32 %v2640_v34, %v2641_v42 }
 0xb47   : > { %v2643_v44 = vrot.slane %v2642_v38, 1 }
 0xb49   : > { %v2644_v46 = vmax.f32 %v2642_v38, %v2643_v44 }
 0xb98   : > { %v2959_v45 = vpop.f32.mrb[44].mxu1 }
 0xb99   : > { %v2960_v57 = vadd.f32 %v3566_v56, %v2959_v45  ;;  %v4131_v20 = vpop.f32.mrb[45].mxu1 }
 0xb9a   : > { %v2962_v58 = vpop.f32.mrb[46].mxu1 }
 0xb9b   : > { %v4132_v59 = vpop.f32.mrb[47].mxu1  ;;  %v2965_v60 = vsel %vm661_vm2, %v2960_v57, -inf }
 0xbca   : > { %v2331_v36 = vpop.xlane.xlu1 %2330 }
 0xbcb   : > { %v2332_v40 = vcvt.f32.s32 %v2331_v36 }
 0xbcd   : > { %v2335_v41 = vadd.s32 %v2334_v37, %v2332_v40 }
 0xbcf   : > { %v2336_v43 = vrot.slane %v2335_v41, 4 }
 0xbd1   : > { %vm2337_vm15 = vcmp.lt.s32.totalorder %v2335_v41, %v2336_v43 }
 0xbd2   : > { %v2338_v21 = vsel %vm2337_vm15, %v2335_v41, %v2336_v43 }
 0xbd3   : > { %v2339_v35 = vrot.slane %v2338_v21, 2 }
 0xbd5   : > { %vm2340_vm4 = vcmp.lt.s32.totalorder %v2338_v21, %v2339_v35 }
 0xbd6   : > { %v2341_v31 = vsel %vm2340_vm4, %v2338_v21, %v2339_v35  ;;  %vm3017_vm4 = vcmask 1046528  }
 0xbd7   : > { %v2342_v16 = vrot.slane %v2341_v31, 1 }
 0xbd9   : > { %vm2343_vm5 = vcmp.lt.s32.totalorder %v2341_v31, %v2342_v16 }
 0xbda   : > { %v2344_v27 = vsel %vm2343_vm5, %v2341_v31, %v2342_v16 }
 0xbdb   : > { %4155 = vpush %v2344_v27 }
 0xbdc   : > { %4157 = vpush %v2644_v46 }
 0xc0c   : > { %s4156_s28 = spop %4155 }
 0xc0d   : > { %v2346_v48 = vstv %s4156_s28  ;;  %s4158_s7 = spop %4157 }
 0xc0e   : > { %v3014_v50 = vsel %vm3013_vm6, %v5052_v62, %v2346_v48  ;;  %v2646_v51 = vstv %s4158_s7 }
 0xc0f   : > { %vm2647_vm7 = vcmp.eq.f32.partialorder %v5060_v7, %v2646_v51 }
 0xc10   : > { %vm2648_vm8 = vmand %vm2647_vm7, %vm372_vm3 }
 0xc11   : > { %v2649_v53 = vsel %vm2648_vm8, %v4735_v54, 64 }
 0xc12   : > { %v2650_v55 = vsel %vm661_vm2, %v2649_v53, 2147483647 }
 0xc13   : > { %v2652_v49 = vshra.s32 %v2650_v55, 16  ;;  %v2651_v61 = vand.u32 65535, %v2650_v55 }
 0xc15   : > { %v2654_v39 = vcvt.s32.f32 %v2652_v49  ;;  %v2653_v1 = vcvt.s32.f32 %v2651_v61 }
 0xc17   : > { %2655 = vmin.xlane.f32.xlu1 %v2654_v39 }
 0xc1b   : > { %2966 = vmax.xlane.f32.xlu1 %v2965_v60 }
 0xca4   : > { %v2656_v62 = vpop.xlane.xlu1 %2655 }
 0xca5   : > { %vm2657_vm1 = vcmp.eq.f32.partialorder %v2654_v39, %v2656_v62  ;;  %v2662_v5 = vcvt.f32.s32 %v2656_v62 }
 0xca6   : > { %v2658_v2 = vsel %vm2657_vm1, %v2653_v1, inf }
 0xca7   : > { %2659 = vmin.xlane.f32.xlu0 %v2658_v2  ;;  %v2663_v47 = vshll.u32 %v2662_v5, 16 }
 0xca8   : > { %v2967_v3 = vpop.xlane.xlu1 %2966 }
 0xca9   : > { %v2968_v4 = vrot.slane %v2967_v3, 4 }
 0xcab   : > { %v2969_v6 = vmax.f32 %v2967_v3, %v2968_v4 }
 0xcad   : > { %v2970_v63 = vrot.slane %v2969_v6, 2 }
 0xcaf   : > { %v2971_v11 = vmax.f32 %v2969_v6, %v2970_v63 }
 0xcb1   : > { %v2972_v17 = vrot.slane %v2971_v11, 1 }
 0xcb3   : > { %v2973_v22 = vmax.f32 %v2971_v11, %v2972_v17 }
 0xd34   : > { %v2660_v7 = vpop.xlane.xlu0 %2659 }
 0xd35   : > { %v2661_v19 = vcvt.f32.s32 %v2660_v7 }
 0xd37   : > { %v2664_v8 = vadd.s32 %v2663_v47, %v2661_v19 }
 0xd39   : > { %v2665_v9 = vrot.slane %v2664_v8, 4 }
 0xd3b   : > { %vm2666_vm0 = vcmp.lt.s32.totalorder %v2664_v8, %v2665_v9 }
 0xd3c   : > { %v2667_v10 = vsel %vm2666_vm0, %v2664_v8, %v2665_v9 }
 0xd3d   : > { %v2668_v13 = vrot.slane %v2667_v10, 2 }
 0xd3f   : > { %vm2669_vm9 = vcmp.lt.s32.totalorder %v2667_v10, %v2668_v13 }
 0xd40   : > { %v2670_v14 = vsel %vm2669_vm9, %v2667_v10, %v2668_v13 }
 0xd41   : > { %v2671_v18 = vrot.slane %v2670_v14, 1 }
 0xd43   : > { %vm2672_vm10 = vcmp.lt.s32.totalorder %v2670_v14, %v2671_v18 }
 0xd44   : > { %v2673_v15 = vsel %vm2672_vm10, %v2670_v14, %v2671_v18 }
 0xd45   : > { %4159 = vpush %v2673_v15 }
 0xd46   : > { %4161 = vpush %v2973_v22 }
 0xd76   : > { %s4160_s8 = spop %4159 }
 0xd77   : > { %v2675_v23 = vstv %s4160_s8  ;;  %s4162_s9 = spop %4161 }
 0xd78   : > { %v3016_v24 = vsel %vm3015_vm11, %v3014_v50, %v2675_v23  ;;  %v2975_v25 = vstv %s4162_s9 }
 0xd79   : > { %vm2976_vm12 = vcmp.eq.f32.partialorder %v2960_v57, %v2975_v25 }
 0xd7a   : > { %vm2977_vm13 = vmand %vm2976_vm12, %vm372_vm3 }
 0xd7b   : > { %v2978_v26 = vsel %vm2977_vm13, %v4735_v54, 64 }
 0xd7c   : > { %v2979_v28 = vsel %vm661_vm2, %v2978_v26, 2147483647 }
 0xd7d   : > { %v2981_v12 = vshra.s32 %v2979_v28, 16  ;;  %v2980_v30 = vand.u32 65535, %v2979_v28 }
 0xd7f   : > { %v2983_v29 = vcvt.s32.f32 %v2981_v12  ;;  %v2982_v32 = vcvt.s32.f32 %v2980_v30 }
 0xd81   : > { %2984 = vmin.xlane.f32.xlu0 %v2983_v29 }
 0xe0e   : > { %v2985_v0 = vpop.xlane.xlu0 %2984 }
 0xe0f   : > { %vm2986_vm14 = vcmp.eq.f32.partialorder %v2983_v29, %v2985_v0  ;;  %v2991_v34 = vcvt.f32.s32 %v2985_v0 }
 0xe10   : > { %v2987_v33 = vsel %vm2986_vm14, %v2982_v32, inf }
 0xe11   : > { %2988 = vmin.xlane.f32.xlu1 %v2987_v33  ;;  %v2992_v37 = vshll.u32 %v2991_v34, 16 }
 0xe9e   : > { %v2989_v36 = vpop.xlane.xlu1 %2988 }
 0xe9f   : > { %v2990_v52 = vcvt.f32.s32 %v2989_v36 }
 0xea1   : > { %v2993_v40 = vadd.s32 %v2992_v37, %v2990_v52 }
 0xea3   : > { %v2994_v41 = vrot.slane %v2993_v40, 4 }
 0xea5   : > { %vm2995_vm3 = vcmp.lt.s32.totalorder %v2993_v40, %v2994_v41 }
 0xea6   : > { %v2996_v54 = vsel %vm2995_vm3, %v2993_v40, %v2994_v41 }
 0xea7   : > { %v2997_v42 = vrot.slane %v2996_v54, 2 }
 0xea9   : > { %vm2998_vm2 = vcmp.lt.s32.totalorder %v2996_v54, %v2997_v42 }
 0xeaa   : > { %v2999_v43 = vsel %vm2998_vm2, %v2996_v54, %v2997_v42 }
 0xeab   : > { %v3000_v21 = vrot.slane %v2999_v43, 1 }
 0xead   : > { %vm3001_vm15 = vcmp.lt.s32.totalorder %v2999_v43, %v3000_v21 }
 0xeae   : > { %v3002_v38 = vsel %vm3001_vm15, %v2999_v43, %v3000_v21 }
 0xeaf   : > { %4163 = vpush %v3002_v38 }
 0xee0   : > { %s4164_s18 = spop %4163 }
 0xee1   : > { %v3004_v35 = vstv %s4164_s18 }
 0xee2   : > { %v3018_v31 = vsel %vm3017_vm4, %v3016_v24, %v3004_v35 }
 0xee3   : > { %3019 = vst [vmem:[%s362_s17] sm:$0xff] %v3018_v31 }
 0xee4 PF: > { %p16_p9 = scmp.ge.s32.totalorder %s4480_s26, 4   ;;  %s5121_s21 = smov %s4408_s22 }
 0xee5   : > { %s5122_s22 = smov %s4412_s23  ;;  %s5123_s23 = smov %s4490_s29 }
 0xee6   : > { %s5124_s24 = smov %s4480_s26  ;;  %18 = sbr.rel (!%p16_p9) target bundleno = 3 (0x3), region = 131 }
 0xeed   :  { %3039 = vsyncpa [#allocation3], 1 }
 0xeee   :  { %3041 = vsyncpa [#allocation3 + $0x1], 1 }

</bundles_post_ra>
